<compile_context>
chip_gen: v7x
topology: tpu7x:2x2x1
jax: 0.10.0
libtpu: 0.0.40
codegen_flags: <defaults>
</compile_context>

<pallas_src>
import functools

import numpy as np
import jax
import jax.numpy as jnp
from jax import lax
from jax.experimental import pallas as pl
from jax.experimental.pallas import tpu as pltpu


# ------------------------------ fused kernel --------------------------------

def _fused_ae_kernel(x_ref, w_ref, xhat_ref, z_ref, *, npix, lp):
    """x_ref: (CB, N) flat images; w_ref: packed weight slab; outputs lane-dense."""
    N, Lp = npix, lp
    BR = 3 * N                      # start row of the bias band (one bias per 8-row stripe)

    def mm(a, b):
        # Default MXU precision (bf16 passes) is ample at these magnitudes; use
        # precision=lax.Precision.HIGHEST here if bit-parity with f32 torch is required.
        return jnp.dot(a, b, preferred_element_type=jnp.float32)

    x = x_ref[...]                                               # (CB, N)

    # conv1 (1->4, 3x3, pad 1) + ReLU, then 2x2 max-pool = max over 4 phase column blocks
    y1 = jnp.maximum(mm(x, w_ref[0:N, :]) + w_ref[BR:BR + 1, :], 0.0)          # (CB, 4N)
    p1 = jnp.maximum(jnp.maximum(y1[:, 0:N], y1[:, N:2 * N]),
                     jnp.maximum(y1[:, 2 * N:3 * N], y1[:, 3 * N:4 * N]))      # (CB, N)

    # conv2 (4->16, 3x3, pad 1) + ReLU, then 2x2 max-pool
    y2 = jnp.maximum(mm(p1, w_ref[N:2 * N, :]) + w_ref[BR + 8:BR + 9, :], 0.0)  # (CB, 4N)
    p2 = jnp.maximum(jnp.maximum(y2[:, 0:N], y2[:, N:2 * N]),
                     jnp.maximum(y2[:, 2 * N:3 * N], y2[:, 3 * N:4 * N]))      # (CB, N)
    # p2 lanes are exactly torch's NCHW flatten of the pooled (16, Y/4, X/4) map.

    # fc -> z  (lanes [0, L) real latent, lanes [L, Lp) are exact zeros)
    z = mm(p2, w_ref[2 * N:3 * N, 0:Lp]) + w_ref[BR + 16:BR + 17, 0:Lp]        # (CB, Lp)
    z_ref[...] = z

    # i_fc (zero-padded rows beyond L make the padded z lanes harmless)
    h = mm(z, w_ref[2 * N:2 * N + Lp, Lp + 2 * N:Lp + 3 * N]) \
        + w_ref[BR + 24:BR + 25, 0:N]                                          # (CB, N)

    # t_conv1 (16->4, 3x3, stride 2, pad 1, outpad 1) + ReLU, as one block-sparse matmul
    g = jnp.maximum(mm(h, w_ref[2 * N:3 * N, Lp:Lp + N])
                    + w_ref[BR + 32:BR + 33, 0:N], 0.0)                        # (CB, N)

    # t_conv2 (4->1, 3x3, stride 2, pad 1, outpad 1) -> x_hat (NCHW flat, lane-dense)
    xhat_ref[...] = mm(g, w_ref[2 * N:3 * N, Lp + N:Lp + 2 * N]) \
        + w_ref[BR + 40:BR + 41, 0:N]                                          # (CB, N)


# ------------------------------ parameter packing ---------------------------

def _pack_conv_pool(w, b, H, Wd):
    """3x3 conv (pad 1) on an NCHW-flattened (Cin,H,Wd) input as a dense matmul.

    Output columns ordered (pool_phase_py, pool_phase_px, Cout, H//2, Wd//2), so a 2x2
    max-pool is a max over the 4 contiguous column blocks.  Returns (K, 4*Cout*Ho*Wo)
    weight and matching per-column bias."""
    Cout, Cin, _, _ = w.shape
    Ho, Wo = H // 2, Wd // 2
    K = Cin * H * Wd
    Wm = np.zeros((K, 4 * Cout * Ho * Wo), np.float32)
    Bm = np.zeros((4 * Cout * Ho * Wo,), np.float32)
    for py in range(2):
        for px in range(2):
            for co in range(Cout):
                for i in range(Ho):
                    for j in range(Wo):
                        col = ((py * 2 + px) * Cout + co) * Ho * Wo + i * Wo + j
                        oy, ox = 2 * i + py, 2 * j + px
                        Bm[col] = b[co]
                        for ci in range(Cin):
                            for ky in range(3):
                                for kx in range(3):
                                    y, x = oy + ky - 1, ox + kx - 1
                                    if 0 <= y < H and 0 <= x < Wd:
                                        Wm[(ci * H + y) * Wd + x, col] = w[co, ci, ky, kx]
    return Wm, Bm


def _pack_tconv(w, b, H, Wd):
    """ConvTranspose2d(3x3, stride 2, pad 1, output_padding 1) on NCHW-flattened
    (Cin,H,Wd) -> (Cout,2H,2Wd) as a dense matmul (rows=input flat, cols=output flat)."""
    Cin, Cout, _, _ = w.shape
    Ho, Wo = 2 * H, 2 * Wd
    Wm = np.zeros((Cin * H * Wd, Cout * Ho * Wo), np.float32)
    Bm = np.zeros((Cout * Ho * Wo,), np.float32)
    for co in range(Cout):
        Bm[co * Ho * Wo:(co + 1) * Ho * Wo] = b[co]
    for ci in range(Cin):
        for iy in range(H):
            for ix in range(Wd):
                row = (ci * H + iy) * Wd + ix
                for co in range(Cout):
                    for ky in range(3):
                        for kx in range(3):
                            oy, ox = 2 * iy - 1 + ky, 2 * ix - 1 + kx
                            if 0 <= oy < Ho and 0 <= ox < Wo:
                                Wm[row, (co * Ho + oy) * Wo + ox] += w[ci, co, ky, kx]
    return Wm, Bm


def pack_params(params, input_size_x, input_size_y):
    """One-time offline packing of all torch-layout parameters into a single weight slab.

    Slab layout (N = Y*X, Lp = latent dim rounded up to 128, width = max(4N, 3N+Lp)):
      rows [0,   N) : conv1  block-sparse weight (N, 4N), pool-phase-major columns
      rows [N,  2N) : conv2  block-sparse weight (N, 4N)
      rows [2N, 3N) : cols [0,Lp) fc | [Lp,Lp+N) t_conv1 | [Lp+N,Lp+2N) t_conv2
                      rows [2N,2N+Lp) x cols [Lp+2N,Lp+3N) i_fc
      rows [3N, 3N+48): biases, one per 8-row stripe (conv1, conv2, fc, i_fc, t1, t2).
    """
    Y, X = int(input_size_y), int(input_size_x)
    assert Y % 4 == 0 and X % 4 == 0, "H and W must be divisible by 4"
    N = Y * X
    gy2, gx2 = Y // 2, X // 2
    gy, gx = Y // 4, X // 4
    L = int(params['fc_b'].shape[0])
    Lp = ((L + 127) // 128) * 128
    assert Lp <= N, "latent dim too large for this packing layout"
    Wl = max(4 * N, 3 * N + Lp)

    p = {k: np.asarray(v, np.float32) for k, v in params.items()}

    W1, B1 = _pack_conv_pool(p['conv1_w'], p['conv1_b'], Y, X)        # (N, 4N)
    W2, B2 = _pack_conv_pool(p['conv2_w'], p['conv2_b'], gy2, gx2)    # (N, 4N)
    Wt1, Bt1 = _pack_tconv(p['t_conv1_w'], p['t_conv1_b'], gy, gx)    # (N, N)
    Wt2, Bt2 = _pack_tconv(p['t_conv2_w'], p['t_conv2_b'], gy2, gx2)  # (N, N)

    Wfc = np.zeros((N, Lp), np.float32)
    Wfc[:, :L] = p['fc_w'].T
    Bfc = np.zeros((Lp,), np.float32)
    Bfc[:L] = p['fc_b']
    Wifc = np.zeros((Lp, N), np.float32)
    Wifc[:L, :] = p['i_fc_w'].T
    Bifc = p['i_fc_b']

    slab = np.zeros((3 * N + 48, Wl), np.float32)
    slab[0:N, 0:4 * N] = W1
    slab[N:2 * N, 0:4 * N] = W2
    slab[2 * N:3 * N, 0:Lp] = Wfc
    slab[2 * N:3 * N, Lp:Lp + N] = Wt1
    slab[2 * N:3 * N, Lp + N:Lp + 2 * N] = Wt2
    slab[2 * N:2 * N + Lp, Lp + 2 * N:Lp + 3 * N] = Wifc
    BR = 3 * N
    slab[BR + 0, 0:4 * N] = B1
    slab[BR + 8, 0:4 * N] = B2
    slab[BR + 16, 0:Lp] = Bfc
    slab[BR + 24, 0:N] = Bifc
    slab[BR + 32, 0:N] = Bt1
    slab[BR + 40, 0:N] = Bt2
    return jnp.asarray(slab)


# ------------------------------ model forward -------------------------------

def _round_up(a, m):
    return ((a + m - 1) // m) * m


def ae_forward(slab, x_nchw, *, dim_latent_space):
    """ConvolutionalAutoencoder.forward -> (x_hat [NCHW], z). One fused Pallas call."""
    B, cin, Y, X = x_nchw.shape
    assert cin == 1 and Y % 4 == 0 and X % 4 == 0
    N = Y * X
    L = int(dim_latent_space)
    Lp = ((L + 127) // 128) * 128
    assert slab.shape == (3 * N + 48, max(4 * N, 3 * N + Lp)), "slab / model size mismatch"

    x_flat = x_nchw.reshape(B, N).astype(jnp.float32)

    # Batch row-chunks: >=8 sublanes per block, <=256 rows; chunks go on a parallel grid
    # axis so both v7x TensorCores get work for large (production) batches.
    CB = min(_round_up(max(B, 1), 8), 256)
    Bp = _round_up(B, CB)
    if Bp != B:
        x_flat = jnp.pad(x_flat, ((0, Bp - B), (0, 0)))

    Rw, Cw = slab.shape
    kern = functools.partial(_fused_ae_kernel, npix=N, lp=Lp)
    xhat_flat, z_pad = pl.pallas_call(
        kern,
        out_shape=(jax.ShapeDtypeStruct((Bp, N), jnp.float32),
                   jax.ShapeDtypeStruct((Bp, Lp), jnp.float32)),
        grid=(Bp // CB,),
        in_specs=[pl.BlockSpec((CB, N), lambda i: (i, 0)),
                  pl.BlockSpec((Rw, Cw), lambda i: (0, 0))],
        out_specs=(pl.BlockSpec((CB, N), lambda i: (i, 0)),
                   pl.BlockSpec((CB, Lp), lambda i: (i, 0))),
        compiler_params=pltpu.CompilerParams(dimension_semantics=("parallel",)),
    )(x_flat, slab)

    x_hat = xhat_flat[:B].reshape(B, 1, Y, X)
    z = z_pad[:B, :L]
    return x_hat, z


def triplet_forward(slab, anchor, positive, negative, *, dim_latent_space):
    """ConvolutionalAutoencoderTriplet.forward -- one fused pass over the 3B batch."""
    B = anchor.shape[0]
    x = jnp.concatenate([anchor, positive, negative], axis=0)
    x_hat, z = ae_forward(slab, x, dim_latent_space=dim_latent_space)
    return (x_hat[:B], z[:B], x_hat[B:2 * B], z[B:2 * B], x_hat[2 * B:], z[2 * B:])


# ------------------------------ reference (plain XLA) ------------------------

def _reference_forward(params, x):
    hp = lax.Precision.HIGHEST
    B, _, Y, X = x.shape
    gy, gx = Y // 4, X // 4
    dn = ('NCHW', 'OIHW', 'NCHW')

    def conv(v, w, b):
        o = lax.conv_general_dilated(v, w, (1, 1), ((1, 1), (1, 1)),
                                     dimension_numbers=dn, precision=hp)
        return o + b[None, :, None, None]

    def tconv(v, w, b):
        wf = jnp.flip(w, (2, 3)).transpose(1, 0, 2, 3)
        o = lax.conv_general_dilated(v, wf, (1, 1), ((1, 2), (1, 2)),
                                     lhs_dilation=(2, 2), dimension_numbers=dn, precision=hp)
        return o + b[None, :, None, None]

    def pool(v):
        return lax.reduce_window(v, -jnp.inf, lax.max, (1, 1, 2, 2), (1, 1, 2, 2), 'VALID')

    h = pool(jax.nn.relu(conv(x, params['conv1_w'], params['conv1_b'])))
    h = pool(jax.nn.relu(conv(h, params['conv2_w'], params['conv2_b'])))
    flat = h.reshape(B, 16 * gy * gx)
    z = jnp.dot(flat, params['fc_w'].T, precision=hp) + params['fc_b']
    g = jnp.dot(z, params['i_fc_w'].T, precision=hp) + params['i_fc_b']
    g = g.reshape(B, 16, gy, gx)
    g = jax.nn.relu(tconv(g, params['t_conv1_w'], params['t_conv1_b']))
    x_hat = tconv(g, params['t_conv2_w'], params['t_conv2_b'])
    return x_hat, z


# ------------------------------ parameters ----------------------------------

def init_params(key, input_size_x, input_size_y, dim_latent_space):
    hp_, wp_ = input_size_y // 4, input_size_x // 4
    F = 16 * hp_ * wp_
    ks = jax.random.split(key, 12)

    def u(k, shape, fan_in):
        bound = 1.0 / (fan_in ** 0.5)
        return jax.random.uniform(k, shape, jnp.float32, -bound, bound)

    return {
        'conv1_w': u(ks[0], (4, 1, 3, 3), 1 * 9),        # Conv2d (Cout, Cin, kh, kw)
        'conv1_b': u(ks[1], (4,), 1 * 9),
        'conv2_w': u(ks[2], (16, 4, 3, 3), 4 * 9),
        'conv2_b': u(ks[3], (16,), 4 * 9),
        'fc_w':    u(ks[4], (dim_latent_space, F), F),   # Linear (out, in)
        'fc_b':    u(ks[5], (dim_latent_space,), F),
        'i_fc_w':  u(ks[6], (F, dim_latent_space), dim_latent_space),
        'i_fc_b':  u(ks[7], (F,), dim_latent_space),
        't_conv1_w': u(ks[8], (16, 4, 3, 3), 4 * 9),     # ConvTranspose2d (Cin, Cout, kh, kw)
        't_conv1_b': u(ks[9], (4,), 4 * 9),
        't_conv2_w': u(ks[10], (4, 1, 3, 3), 1 * 9),
        't_conv2_b': u(ks[11], (1,), 1 * 9),
    }


if __name__ == "__main__":
    key = jax.random.PRNGKey(0)
    B, Y, X, L = 2, 16, 16, 16
    kp, ka, kq, kn = jax.random.split(key, 4)
    params = init_params(kp, X, Y, L)
    slab = pack_params(params, X, Y)
    anchor = jax.random.normal(ka, (B, 1, Y, X), jnp.float32)
    positive = jax.random.normal(kq, (B, 1, Y, X), jnp.float32)
    negative = jax.random.normal(kn, (B, 1, Y, X), jnp.float32)

    fwd = jax.jit(functools.partial(triplet_forward, dim_latent_space=L))
    outs = jax.block_until_ready(fwd(slab, anchor, positive, negative))
    x_hat_a, z_a, x_hat_p, z_p, x_hat_n, z_n = outs
    assert x_hat_a.shape == (B, 1, Y, X) and x_hat_p.shape == (B, 1, Y, X)
    assert x_hat_n.shape == (B, 1, Y, X)
    assert z_a.shape == (B, L) and z_p.shape == (B, L) and z_n.shape == (B, L)

    # numerical check of the fused kernel against the plain-XLA reference
    ref = jax.jit(_reference_forward)
    for x_in, xh, zz in ((anchor, x_hat_a, z_a), (positive, x_hat_p, z_p),
                         (negative, x_hat_n, z_n)):
        xh_r, z_r = ref(params, x_in)
        assert float(jnp.max(jnp.abs(xh - xh_r))) < 1e-2, "x_hat mismatch vs reference"
        assert float(jnp.max(jnp.abs(zz - z_r))) < 1e-2, "z mismatch vs reference"

    print("KERNEL_OK")
</pallas_src>

<mosaic_0001>
module attributes {stable_mosaic.version = 11 : i64} {
  func.func @_fused_ae_kernel(%arg0: i32, %arg1: memref<8x256xf32, #tpu.memory_space<vmem>>, %arg2: memref<816x1024xf32, #tpu.memory_space<vmem>>, %arg3: memref<8x256xf32, #tpu.memory_space<vmem>>, %arg4: memref<8x128xf32, #tpu.memory_space<vmem>>) attributes {dimension_semantics = [#tpu.dimension_semantics<parallel>], iteration_bounds = array<i64: 1>, scalar_prefetch = 0 : i64, scratch_operands = 0 : i64, tpu.core_type = #tpu.core_type<tc>, window_params = [{transform_indices = @transform_0, window_bounds = array<i64: 8, 256>}, {pipeline_mode = #tpu.pipeline_mode<synchronous>, transform_indices = @transform_1, window_bounds = array<i64: 816, 1024>}, {transform_indices = @transform_2, window_bounds = array<i64: 8, 256>}, {transform_indices = @transform_3, window_bounds = array<i64: 8, 128>}]} {
    %c0 = arith.constant 0 : index
    %c0_0 = arith.constant 0 : index
    %0 = vector.load %arg1[%c0, %c0_0] : memref<8x256xf32, #tpu.memory_space<vmem>>, vector<8x256xf32>
    %c0_1 = arith.constant 0 : index
    %c0_2 = arith.constant 0 : index
    %1 = vector.load %arg2[%c0_1, %c0_2] : memref<816x1024xf32, #tpu.memory_space<vmem>>, vector<256x1024xf32>
    %cst = arith.constant dense<0.000000e+00> : vector<8x1024xf32>
    %2 = tpu.matmul %0, %1, %cst {dimension_numbers = #tpu.dot_dimension_numbers<[1], [0], [0], [1], [0, 0, 1, 1], [], []>} : vector<8x256xf32>, vector<256x1024xf32>, vector<8x1024xf32> -> vector<8x1024xf32>
    %c768 = arith.constant 768 : index
    %c0_3 = arith.constant 0 : index
    %3 = vector.load %arg2[%c768, %c0_3] : memref<816x1024xf32, #tpu.memory_space<vmem>>, vector<1x1024xf32>
    %4 = vector.broadcast %3 : vector<1x1024xf32> to vector<8x1024xf32>
    %5 = arith.addf %2, %4 : vector<8x1024xf32>
    %cst_4 = arith.constant 0.000000e+00 : f32
    %6 = vector.broadcast %cst_4 : f32 to vector<8x1024xf32>
    %7 = arith.maximumf %5, %6 : vector<8x1024xf32>
    %8 = vector.extract_strided_slice %7 {offsets = [0, 0], sizes = [8, 256], strides = [1, 1]} : vector<8x1024xf32> to vector<8x256xf32>
    %9 = vector.extract_strided_slice %7 {offsets = [0, 256], sizes = [8, 256], strides = [1, 1]} : vector<8x1024xf32> to vector<8x256xf32>
    %10 = arith.maximumf %8, %9 : vector<8x256xf32>
    %11 = vector.extract_strided_slice %7 {offsets = [0, 512], sizes = [8, 256], strides = [1, 1]} : vector<8x1024xf32> to vector<8x256xf32>
    %12 = vector.extract_strided_slice %7 {offsets = [0, 768], sizes = [8, 256], strides = [1, 1]} : vector<8x1024xf32> to vector<8x256xf32>
    %13 = arith.maximumf %11, %12 : vector<8x256xf32>
    %14 = arith.maximumf %10, %13 : vector<8x256xf32>
    %c256 = arith.constant 256 : index
    %c0_5 = arith.constant 0 : index
    %15 = vector.load %arg2[%c256, %c0_5] : memref<816x1024xf32, #tpu.memory_space<vmem>>, vector<256x1024xf32>
    %cst_6 = arith.constant dense<0.000000e+00> : vector<8x1024xf32>
    %16 = tpu.matmul %14, %15, %cst_6 {dimension_numbers = #tpu.dot_dimension_numbers<[1], [0], [0], [1], [0, 0, 1, 1], [], []>} : vector<8x256xf32>, vector<256x1024xf32>, vector<8x1024xf32> -> vector<8x1024xf32>
    %c776 = arith.constant 776 : index
    %c0_7 = arith.constant 0 : index
    %17 = vector.load %arg2[%c776, %c0_7] : memref<816x1024xf32, #tpu.memory_space<vmem>>, vector<1x1024xf32>
    %18 = vector.broadcast %17 : vector<1x1024xf32> to vector<8x1024xf32>
    %19 = arith.addf %16, %18 : vector<8x1024xf32>
    %cst_8 = arith.constant 0.000000e+00 : f32
    %20 = vector.broadcast %cst_8 : f32 to vector<8x1024xf32>
    %21 = arith.maximumf %19, %20 : vector<8x1024xf32>
    %22 = vector.extract_strided_slice %21 {offsets = [0, 0], sizes = [8, 256], strides = [1, 1]} : vector<8x1024xf32> to vector<8x256xf32>
    %23 = vector.extract_strided_slice %21 {offsets = [0, 256], sizes = [8, 256], strides = [1, 1]} : vector<8x1024xf32> to vector<8x256xf32>
    %24 = arith.maximumf %22, %23 : vector<8x256xf32>
    %25 = vector.extract_strided_slice %21 {offsets = [0, 512], sizes = [8, 256], strides = [1, 1]} : vector<8x1024xf32> to vector<8x256xf32>
    %26 = vector.extract_strided_slice %21 {offsets = [0, 768], sizes = [8, 256], strides = [1, 1]} : vector<8x1024xf32> to vector<8x256xf32>
    %27 = arith.maximumf %25, %26 : vector<8x256xf32>
    %28 = arith.maximumf %24, %27 : vector<8x256xf32>
    %c512 = arith.constant 512 : index
    %c0_9 = arith.constant 0 : index
    %29 = vector.load %arg2[%c512, %c0_9] : memref<816x1024xf32, #tpu.memory_space<vmem>>, vector<256x128xf32>
    %cst_10 = arith.constant dense<0.000000e+00> : vector<8x128xf32>
    %30 = tpu.matmul %28, %29, %cst_10 {dimension_numbers = #tpu.dot_dimension_numbers<[1], [0], [0], [1], [0, 0, 1, 1], [], []>} : vector<8x256xf32>, vector<256x128xf32>, vector<8x128xf32> -> vector<8x128xf32>
    %c784 = arith.constant 784 : index
    %c0_11 = arith.constant 0 : index
    %31 = vector.load %arg2[%c784, %c0_11] : memref<816x1024xf32, #tpu.memory_space<vmem>>, vector<1x128xf32>
    %32 = vector.broadcast %31 : vector<1x128xf32> to vector<8x128xf32>
    %33 = arith.addf %30, %32 : vector<8x128xf32>
    %c0_12 = arith.constant 0 : index
    %c0_13 = arith.constant 0 : index
    %34 = vector.load %arg4[%c0_12, %c0_13] : memref<8x128xf32, #tpu.memory_space<vmem>>, vector<8x128xf32>
    tpu.vector_store %arg4[%c0_12, %c0_13], %33 {strides = array<i32>} : memref<8x128xf32, #tpu.memory_space<vmem>>, vector<8x128xf32>,
    %c512_14 = arith.constant 512 : index
    %c640 = arith.constant 640 : index
    %35 = vector.load %arg2[%c512_14, %c640] : memref<816x1024xf32, #tpu.memory_space<vmem>>, vector<128x256xf32>
    %cst_15 = arith.constant dense<0.000000e+00> : vector<8x256xf32>
    %36 = tpu.matmul %33, %35, %cst_15 {dimension_numbers = #tpu.dot_dimension_numbers<[1], [0], [0], [1], [0, 0, 1, 1], [], []>} : vector<8x128xf32>, vector<128x256xf32>, vector<8x256xf32> -> vector<8x256xf32>
    %c792 = arith.constant 792 : index
    %c0_16 = arith.constant 0 : index
    %37 = vector.load %arg2[%c792, %c0_16] : memref<816x1024xf32, #tpu.memory_space<vmem>>, vector<1x256xf32>
    %38 = vector.broadcast %37 : vector<1x256xf32> to vector<8x256xf32>
    %39 = arith.addf %36, %38 : vector<8x256xf32>
    %c512_17 = arith.constant 512 : index
    %c128 = arith.constant 128 : index
    %40 = vector.load %arg2[%c512_17, %c128] : memref<816x1024xf32, #tpu.memory_space<vmem>>, vector<256x256xf32>
    %cst_18 = arith.constant dense<0.000000e+00> : vector<8x256xf32>
    %41 = tpu.matmul %39, %40, %cst_18 {dimension_numbers = #tpu.dot_dimension_numbers<[1], [0], [0], [1], [0, 0, 1, 1], [], []>} : vector<8x256xf32>, vector<256x256xf32>, vector<8x256xf32> -> vector<8x256xf32>
    %c800 = arith.constant 800 : index
    %c0_19 = arith.constant 0 : index
    %42 = vector.load %arg2[%c800, %c0_19] : memref<816x1024xf32, #tpu.memory_space<vmem>>, vector<1x256xf32>
    %43 = vector.broadcast %42 : vector<1x256xf32> to vector<8x256xf32>
    %44 = arith.addf %41, %43 : vector<8x256xf32>
    %cst_20 = arith.constant 0.000000e+00 : f32
    %45 = vector.broadcast %cst_20 : f32 to vector<8x256xf32>
    %46 = arith.maximumf %44, %45 : vector<8x256xf32>
    %c512_21 = arith.constant 512 : index
    %c384 = arith.constant 384 : index
    %47 = vector.load %arg2[%c512_21, %c384] : memref<816x1024xf32, #tpu.memory_space<vmem>>, vector<256x256xf32>
    %cst_22 = arith.constant dense<0.000000e+00> : vector<8x256xf32>
    %48 = tpu.matmul %46, %47, %cst_22 {dimension_numbers = #tpu.dot_dimension_numbers<[1], [0], [0], [1], [0, 0, 1, 1], [], []>} : vector<8x256xf32>, vector<256x256xf32>, vector<8x256xf32> -> vector<8x256xf32>
    %c808 = arith.constant 808 : index
    %c0_23 = arith.constant 0 : index
    %49 = vector.load %arg2[%c808, %c0_23] : memref<816x1024xf32, #tpu.memory_space<vmem>>, vector<1x256xf32>
    %50 = vector.broadcast %49 : vector<1x256xf32> to vector<8x256xf32>
    %51 = arith.addf %48, %50 : vector<8x256xf32>
    %c0_24 = arith.constant 0 : index
    %c0_25 = arith.constant 0 : index
    %52 = vector.load %arg3[%c0_24, %c0_25] : memref<8x256xf32, #tpu.memory_space<vmem>>, vector<8x256xf32>
    tpu.vector_store %arg3[%c0_24, %c0_25], %51 {strides = array<i32>} : memref<8x256xf32, #tpu.memory_space<vmem>>, vector<8x256xf32>,
    return
  }
  func.func @transform_0(%arg0: i32) -> (i32, i32) {
    %c0_i32 = arith.constant 0 : i32
    %c0_i32_0 = arith.constant 0 : i32
    return %arg0, %c0_i32 : i32, i32
  }
  func.func @transform_1(%arg0: i32) -> (i32, i32) {
    %c0_i32 = arith.constant 0 : i32
    %c0_i32_0 = arith.constant 0 : i32
    %c0_i32_1 = arith.constant 0 : i32
    return %c0_i32, %c0_i32_0 : i32, i32
  }
  func.func @transform_2(%arg0: i32) -> (i32, i32) {
    %c0_i32 = arith.constant 0 : i32
    %c0_i32_0 = arith.constant 0 : i32
    return %arg0, %c0_i32 : i32, i32
  }
  func.func @transform_3(%arg0: i32) -> (i32, i32) {
    %c0_i32 = arith.constant 0 : i32
    %c0_i32_0 = arith.constant 0 : i32
    return %arg0, %c0_i32 : i32, i32
  }
}

</mosaic_0001>

<bundles_post_ra>
// kernel: triplet_forward.1
= control target key start
LH: loop header
LB: loop body
LE: loop exit
PB: predicated region body
PF: predicated region fallthrough
CT: control target
= control target key end

     0   :  { %9 = vsyncpa [#allocation3], 0  ;;  %s2523_s12 = smov [#allocation2]   ;;  %s2640_s0 = inlined_call_operand.vmem [shape: f32[8,256], index: 0, kind: input, shape index: {}]   ;;  %s2641_s1 = inlined_call_operand.hbm [shape: f32[816,1024], index: 1, kind: input, shape index: {}]   ;;  %s2642_s2 = inlined_call_operand.vmem [shape: f32[8,256], index: 2, kind: output, shape index: {0}]   ;;  %s2643_s3 = inlined_call_operand.vmem [shape: f32[8,128], index: 3, kind: output, shape index: {1}]  }
   0x1   :  { %s17_s13 = sshll.u32 %s2523_s12, 4  ;;  %s2499_s16 = scalar_lea.hbm %s2641_s1, 104448  ;;  %s18_s13 = int_to_ptr.vmem [resolvable:$true] %s17_s13 }
   0x2   :  { %p2500_p0 = scmp.ne.s32.totalorder %s2641_s1, %s2499_s16  ;;  %p2503_p1 = scmp.lt.u32.totalorder %s2499_s16, %s2641_s1 }
   0x4   :  { %p2505_p2 = pnand %p2503_p1, %p2500_p0 }
   0x6   :  { %2508 = shalt.err (!%p2505_p2)
}
   0x7   :  { %s2509_s21 = scalar_lea.vmem %s18_s13, 104448  ;;  %p2514_p4 = scmp.lt.s32.totalorder %s18_s13, %s18_s13 }
   0x8   :  { %p2510_p3 = scmp.ne.s32.totalorder %s18_s13, %s2509_s21  ;;  %p2515_p5 = scmp.lt.s32.totalorder %s2509_s21, %s2509_s21 }
   0xa   :  { %p2516_p6 = por %p2515_p5, %p2514_p4 }
   0xc   :  { %p2517_p7 = pnand %p2516_p6, %p2510_p3 }
   0xe   :  { %2520 = shalt.err (!%p2517_p7)
}
   0xf   :  { %s2524_s22 = smov 1024   ;;  %s2525_s23 = smov 64  }
  0x10   :  { %23 = dma.hbm_to_vmem [thread:$0]  %s2641_s1, 104448, %s18_s13, [#allocation3], %s2524_s22, %s2524_s22, %s2525_s23  }
  0x11   :  { %2521 = dma.done.wait [#allocation3], 104448  }
  0x12   :  { %2522 = vsyncadd [#allocation3], 4294862848  ;;  %v30_v0 = vld [vmem:[#allocation2 + $0x8] sm:$0xff]  ;;  %v32_v2 = vld [vmem:[#allocation2 + $0x18] sm:$0xff] }
  0x13   :  { %v38_v1 = vld [vmem:[#allocation2 + $0x48] sm:$0xff]  ;;  %v40_v4 = vld [vmem:[#allocation2 + $0x58] sm:$0xff]  ;;  %v29_v5 = vld [vmem:[#allocation2] sm:$0xff] }
  0x14   :  { %v1791_v3 = vpack.c.bf16 %v38_v1, %v30_v0  ;;  %v37_v6 = vld [vmem:[#allocation2 + $0x40] sm:$0xff]  ;;  %v1855_v7 = vpack.c.bf16 %v40_v4, %v32_v2  ;;  %v31_v9 = vld [vmem:[#allocation2 + $0x10] sm:$0xff]  ;;  %v46_v11 = vld [vmem:[#allocation2 + $0x88] sm:$0xff] }
  0x15   :  { %v1793_v8 = vpack.c.bf16 %v37_v6, %v29_v5  ;;  %v39_v10 = vld [vmem:[#allocation2 + $0x50] sm:$0xff]  ;;  %v54_v13 = vld [vmem:[#allocation2 + $0xc8] sm:$0xff]  ;;  %v48_v14 = vld [vmem:[#allocation2 + $0x98] sm:$0xff] }
  0x16   :  { %1792 = vmatprep.subr.bf16.mxu0 %v1791_v3  ;;  %v1857_v12 = vpack.c.bf16 %v39_v10, %v31_v9  ;;  %v56_v15 = vld [vmem:[#allocation2 + $0xd8] sm:$0xff]  ;;  %1856 = vmatprep.subr.bf16.mxu1 %v1855_v7  ;;  %v1795_v16 = vpack.c.bf16 %v54_v13, %v46_v11  ;;  %v45_v18 = vld [vmem:[#allocation2 + $0x80] sm:$0xff]  ;;  %v47_v20 = vld [vmem:[#allocation2 + $0x90] sm:$0xff] }
  0x17   :  { %1794 = vmatpush1.bf16.msra.mxu0 %v1793_v8  ;;  %v1859_v17 = vpack.c.bf16 %v56_v15, %v48_v14  ;;  %v53_v19 = vld [vmem:[#allocation2 + $0xc0] sm:$0xff]  ;;  %v55_v22 = vld [vmem:[#allocation2 + $0xd0] sm:$0xff]  ;;  %v62_v23 = vld [vmem:[#allocation2 + $0x108] sm:$0xff] }
  0x18   :  { %1858 = vmatpush1.bf16.msra.mxu1 %v1857_v12  ;;  %v1797_v21 = vpack.c.bf16 %v53_v19, %v45_v18  ;;  %v70_v24 = vld [vmem:[#allocation2 + $0x148] sm:$0xff]  ;;  %1796 = vmatprep.subr.bf16.mxu0 %v1795_v16  ;;  %v1861_v25 = vpack.c.bf16 %v55_v22, %v47_v20  ;;  %v64_v27 = vld [vmem:[#allocation2 + $0x118] sm:$0xff]  ;;  %v61_v29 = vld [vmem:[#allocation2 + $0x100] sm:$0xff] }
  0x19   :  { %1860 = vmatprep.subr.bf16.mxu1 %v1859_v17  ;;  %v1799_v26 = vpack.c.bf16 %v70_v24, %v62_v23  ;;  %v72_v28 = vld [vmem:[#allocation2 + $0x158] sm:$0xff]  ;;  %v69_v31 = vld [vmem:[#allocation2 + $0x140] sm:$0xff]  ;;  %v63_v32 = vld [vmem:[#allocation2 + $0x110] sm:$0xff] }
  0x1a   :  { %v1863_v30 = vpack.c.bf16 %v72_v28, %v64_v27  ;;  %v71_v33 = vld [vmem:[#allocation2 + $0x150] sm:$0xff]  ;;  %v1801_v34 = vpack.c.bf16 %v69_v31, %v61_v29  ;;  %v78_v35 = vld [vmem:[#allocation2 + $0x188] sm:$0xff]  ;;  %v80_v37 = vld [vmem:[#allocation2 + $0x198] sm:$0xff] }
  0x1b   :  { %1798 = vmatpush1.bf16.msra.mxu0 %v1797_v21  ;;  %v86_v36 = vld [vmem:[#allocation2 + $0x1c8] sm:$0xff]  ;;  %v1865_v38 = vpack.c.bf16 %v71_v33, %v63_v32  ;;  %v88_v40 = vld [vmem:[#allocation2 + $0x1d8] sm:$0xff]  ;;  %v77_v41 = vld [vmem:[#allocation2 + $0x180] sm:$0xff] }
  0x1c   :  { %1862 = vmatpush1.bf16.msra.mxu1 %v1861_v25  ;;  %1800 = vmatprep.subr.bf16.mxu0 %v1799_v26  ;;  %v1803_v39 = vpack.c.bf16 %v86_v36, %v78_v35  ;;  %v85_v42 = vld [vmem:[#allocation2 + $0x1c0] sm:$0xff]  ;;  %v1867_v43 = vpack.c.bf16 %v88_v40, %v80_v37  ;;  %v79_v44 = vld [vmem:[#allocation2 + $0x190] sm:$0xff]  ;;  %v94_v46 = vld [vmem:[#allocation2 + $0x208] sm:$0xff] }
  0x1d   :  { %1864 = vmatprep.subr.bf16.mxu1 %v1863_v30  ;;  %v87_v45 = vld [vmem:[#allocation2 + $0x1d0] sm:$0xff]  ;;  %v102_v47 = vld [vmem:[#allocation2 + $0x248] sm:$0xff]  ;;  %v96_v48 = vld [vmem:[#allocation2 + $0x218] sm:$0xff]  ;;  %v1805_v50 = vpack.c.bf16 %v85_v42, %v77_v41 }
  0x1e   :  { %v104_v49 = vld [vmem:[#allocation2 + $0x258] sm:$0xff]  ;;  %v1869_v51 = vpack.c.bf16 %v87_v45, %v79_v44  ;;  %v1807_v52 = vpack.c.bf16 %v102_v47, %v94_v46  ;;  %v93_v53 = vld [vmem:[#allocation2 + $0x200] sm:$0xff]  ;;  %v95_v55 = vld [vmem:[#allocation2 + $0x210] sm:$0xff] }
  0x1f   :  { %1802 = vmatpush1.bf16.msra.mxu0 %v1801_v34  ;;  %v101_v54 = vld [vmem:[#allocation2 + $0x240] sm:$0xff]  ;;  %v1871_v56 = vpack.c.bf16 %v104_v49, %v96_v48  ;;  %v103_v57 = vld [vmem:[#allocation2 + $0x250] sm:$0xff]  ;;  %v110_v58 = vld [vmem:[#allocation2 + $0x288] sm:$0xff] }
  0x20   :  { %1866 = vmatpush1.bf16.msra.mxu1 %v1865_v38  ;;  %1804 = vmatprep.subr.bf16.mxu0 %v1803_v39  ;;  %v118_v59 = vld [vmem:[#allocation2 + $0x2c8] sm:$0xff]  ;;  %v112_v60 = vld [vmem:[#allocation2 + $0x298] sm:$0xff]  ;;  %v1809_v62 = vpack.c.bf16 %v101_v54, %v93_v53  ;;  %v1873_v63 = vpack.c.bf16 %v103_v57, %v95_v55  ;;  %v109_v1 = vld [vmem:[#allocation2 + $0x280] sm:$0xff] }
  0x21   :  { %1868 = vmatprep.subr.bf16.mxu1 %v1867_v43  ;;  %v120_v61 = vld [vmem:[#allocation2 + $0x2d8] sm:$0xff]  ;;  %v1811_v0 = vpack.c.bf16 %v118_v59, %v110_v58  ;;  %v117_v2 = vld [vmem:[#allocation2 + $0x2c0] sm:$0xff]  ;;  %v111_v3 = vld [vmem:[#allocation2 + $0x290] sm:$0xff] }
  0x22   :  { %v1875_v4 = vpack.c.bf16 %v120_v61, %v112_v60  ;;  %v119_v5 = vld [vmem:[#allocation2 + $0x2d0] sm:$0xff]  ;;  %v126_v6 = vld [vmem:[#allocation2 + $0x308] sm:$0xff]  ;;  %v128_v8 = vld [vmem:[#allocation2 + $0x318] sm:$0xff]  ;;  %v1813_v10 = vpack.c.bf16 %v117_v2, %v109_v1 }
  0x23   :  { %1806 = vmatpush1.bf16.msra.mxu0 %v1805_v50  ;;  %v134_v7 = vld [vmem:[#allocation2 + $0x348] sm:$0xff]  ;;  %v136_v9 = vld [vmem:[#allocation2 + $0x358] sm:$0xff]  ;;  %v1877_v11 = vpack.c.bf16 %v119_v5, %v111_v3  ;;  %v125_v13 = vld [vmem:[#allocation2 + $0x300] sm:$0xff] }
  0x24   :  { %1870 = vmatpush1.bf16.msra.mxu1 %v1869_v51  ;;  %1808 = vmatprep.subr.bf16.mxu0 %v1807_v52  ;;  %v1815_v12 = vpack.c.bf16 %v134_v7, %v126_v6  ;;  %v133_v14 = vld [vmem:[#allocation2 + $0x340] sm:$0xff]  ;;  %v127_v15 = vld [vmem:[#allocation2 + $0x310] sm:$0xff]  ;;  %v1879_v16 = vpack.c.bf16 %v136_v9, %v128_v8  ;;  %v142_v18 = vld [vmem:[#allocation2 + $0x388] sm:$0xff] }
  0x25   :  { %1872 = vmatprep.subr.bf16.mxu1 %v1871_v56  ;;  %v135_v17 = vld [vmem:[#allocation2 + $0x350] sm:$0xff]  ;;  %v150_v19 = vld [vmem:[#allocation2 + $0x3c8] sm:$0xff]  ;;  %v144_v20 = vld [vmem:[#allocation2 + $0x398] sm:$0xff]  ;;  %v1817_v22 = vpack.c.bf16 %v133_v14, %v125_v13 }
  0x26   :  { %v152_v21 = vld [vmem:[#allocation2 + $0x3d8] sm:$0xff]  ;;  %v1881_v23 = vpack.c.bf16 %v135_v17, %v127_v15  ;;  %v1819_v24 = vpack.c.bf16 %v150_v19, %v142_v18  ;;  %v141_v25 = vld [vmem:[#allocation2 + $0x380] sm:$0xff]  ;;  %v143_v27 = vld [vmem:[#allocation2 + $0x390] sm:$0xff] }
  0x27   :  { %1810 = vmatpush1.bf16.msra.mxu0 %v1809_v62  ;;  %v149_v26 = vld [vmem:[#allocation2 + $0x3c0] sm:$0xff]  ;;  %v1883_v28 = vpack.c.bf16 %v152_v21, %v144_v20  ;;  %v151_v29 = vld [vmem:[#allocation2 + $0x3d0] sm:$0xff]  ;;  %v158_v30 = vld [vmem:[#allocation2 + $0x408] sm:$0xff] }
  0x28   :  { %1874 = vmatpush1.bf16.msra.mxu1 %v1873_v63  ;;  %1812 = vmatprep.subr.bf16.mxu0 %v1811_v0  ;;  %v166_v31 = vld [vmem:[#allocation2 + $0x448] sm:$0xff]  ;;  %v160_v32 = vld [vmem:[#allocation2 + $0x418] sm:$0xff]  ;;  %v1821_v34 = vpack.c.bf16 %v149_v26, %v141_v25  ;;  %v1885_v35 = vpack.c.bf16 %v151_v29, %v143_v27  ;;  %v157_v37 = vld [vmem:[#allocation2 + $0x400] sm:$0xff] }
  0x29   :  { %1876 = vmatprep.subr.bf16.mxu1 %v1875_v4  ;;  %v168_v33 = vld [vmem:[#allocation2 + $0x458] sm:$0xff]  ;;  %v1823_v36 = vpack.c.bf16 %v166_v31, %v158_v30  ;;  %v165_v38 = vld [vmem:[#allocation2 + $0x440] sm:$0xff]  ;;  %v159_v39 = vld [vmem:[#allocation2 + $0x410] sm:$0xff] }
  0x2a   :  { %v1887_v40 = vpack.c.bf16 %v168_v33, %v160_v32  ;;  %v167_v41 = vld [vmem:[#allocation2 + $0x450] sm:$0xff]  ;;  %v174_v42 = vld [vmem:[#allocation2 + $0x488] sm:$0xff]  ;;  %v176_v44 = vld [vmem:[#allocation2 + $0x498] sm:$0xff]  ;;  %v1825_v46 = vpack.c.bf16 %v165_v38, %v157_v37 }
  0x2b   :  { %1814 = vmatpush1.bf16.msra.mxu0 %v1813_v10  ;;  %v182_v43 = vld [vmem:[#allocation2 + $0x4c8] sm:$0xff]  ;;  %v184_v45 = vld [vmem:[#allocation2 + $0x4d8] sm:$0xff]  ;;  %v1889_v47 = vpack.c.bf16 %v167_v41, %v159_v39  ;;  %v173_v49 = vld [vmem:[#allocation2 + $0x480] sm:$0xff] }
  0x2c   :  { %1878 = vmatpush1.bf16.msra.mxu1 %v1877_v11  ;;  %1816 = vmatprep.subr.bf16.mxu0 %v1815_v12  ;;  %v1827_v48 = vpack.c.bf16 %v182_v43, %v174_v42  ;;  %v181_v50 = vld [vmem:[#allocation2 + $0x4c0] sm:$0xff]  ;;  %v175_v51 = vld [vmem:[#allocation2 + $0x490] sm:$0xff]  ;;  %v1891_v52 = vpack.c.bf16 %v184_v45, %v176_v44  ;;  %v190_v54 = vld [vmem:[#allocation2 + $0x508] sm:$0xff] }
  0x2d   :  { %1880 = vmatprep.subr.bf16.mxu1 %v1879_v16  ;;  %v183_v53 = vld [vmem:[#allocation2 + $0x4d0] sm:$0xff]  ;;  %v198_v55 = vld [vmem:[#allocation2 + $0x548] sm:$0xff]  ;;  %v192_v56 = vld [vmem:[#allocation2 + $0x518] sm:$0xff]  ;;  %v1829_v58 = vpack.c.bf16 %v181_v50, %v173_v49 }
  0x2e   :  { %v200_v57 = vld [vmem:[#allocation2 + $0x558] sm:$0xff]  ;;  %v1893_v59 = vpack.c.bf16 %v183_v53, %v175_v51  ;;  %v1831_v60 = vpack.c.bf16 %v198_v55, %v190_v54  ;;  %v189_v61 = vld [vmem:[#allocation2 + $0x500] sm:$0xff]  ;;  %v191_v63 = vld [vmem:[#allocation2 + $0x510] sm:$0xff] }
  0x2f   :  { %1818 = vmatpush1.bf16.msra.mxu0 %v1817_v22  ;;  %v197_v62 = vld [vmem:[#allocation2 + $0x540] sm:$0xff]  ;;  %v1895_v0 = vpack.c.bf16 %v200_v57, %v192_v56  ;;  %v199_v1 = vld [vmem:[#allocation2 + $0x550] sm:$0xff]  ;;  %v206_v2 = vld [vmem:[#allocation2 + $0x588] sm:$0xff] }
  0x30   :  { %1882 = vmatpush1.bf16.msra.mxu1 %v1881_v23  ;;  %1820 = vmatprep.subr.bf16.mxu0 %v1819_v24  ;;  %v214_v3 = vld [vmem:[#allocation2 + $0x5c8] sm:$0xff]  ;;  %v208_v4 = vld [vmem:[#allocation2 + $0x598] sm:$0xff]  ;;  %v1833_v6 = vpack.c.bf16 %v197_v62, %v189_v61  ;;  %v205_v7 = vld [vmem:[#allocation2 + $0x580] sm:$0xff]  ;;  %v1897_v8 = vpack.c.bf16 %v199_v1, %v191_v63 }
  0x31   :  { %1884 = vmatprep.subr.bf16.mxu1 %v1883_v28  ;;  %v216_v5 = vld [vmem:[#allocation2 + $0x5d8] sm:$0xff]  ;;  %v1835_v9 = vpack.c.bf16 %v214_v3, %v206_v2  ;;  %v213_v10 = vld [vmem:[#allocation2 + $0x5c0] sm:$0xff]  ;;  %v207_v11 = vld [vmem:[#allocation2 + $0x590] sm:$0xff] }
  0x32   :  { %v215_v12 = vld [vmem:[#allocation2 + $0x5d0] sm:$0xff]  ;;  %v1899_v13 = vpack.c.bf16 %v216_v5, %v208_v4  ;;  %v222_v14 = vld [vmem:[#allocation2 + $0x608] sm:$0xff]  ;;  %v224_v17 = vld [vmem:[#allocation2 + $0x618] sm:$0xff]  ;;  %v1837_v19 = vpack.c.bf16 %v213_v10, %v205_v7 }
  0x33   :  { %1822 = vmatpush1.bf16.msra.mxu0 %v1821_v34  ;;  %v230_v15 = vld [vmem:[#allocation2 + $0x648] sm:$0xff]  ;;  %v232_v18 = vld [vmem:[#allocation2 + $0x658] sm:$0xff]  ;;  %v1901_v20 = vpack.c.bf16 %v215_v12, %v207_v11  ;;  %v221_v22 = vld [vmem:[#allocation2 + $0x600] sm:$0xff] }
  0x34   :  { %1886 = vmatpush1.bf16.msra.mxu1 %v1885_v35  ;;  %1824 = vmatprep.subr.bf16.mxu0 %v1823_v36  ;;  %v2562_v16 = vld [vmem:[%s2640_s0 + $0x8] sm:$0xff]  ;;  %v1839_v21 = vpack.c.bf16 %v230_v15, %v222_v14  ;;  %v229_v23 = vld [vmem:[#allocation2 + $0x640] sm:$0xff]  ;;  %v223_v24 = vld [vmem:[#allocation2 + $0x610] sm:$0xff]  ;;  %v1903_v25 = vpack.c.bf16 %v232_v18, %v224_v17 }
  0x35   :  { %1888 = vmatprep.subr.bf16.mxu1 %v1887_v40  ;;  %394 = vmatprep.mubr.f32.mxu0 %v2562_v16  ;;  %v231_v26 = vld [vmem:[#allocation2 + $0x650] sm:$0xff]  ;;  %v238_v27 = vld [vmem:[#allocation2 + $0x688] sm:$0xff]  ;;  %v240_v29 = vld [vmem:[#allocation2 + $0x698] sm:$0xff]  ;;  %v1841_v31 = vpack.c.bf16 %v229_v23, %v221_v22 }
  0x36   :  { %465 = vmatprep.mubr.f32.mxu1 %v2562_v16  ;;  %v246_v28 = vld [vmem:[#allocation2 + $0x6c8] sm:$0xff]  ;;  %v248_v30 = vld [vmem:[#allocation2 + $0x6d8] sm:$0xff]  ;;  %v1905_v32 = vpack.c.bf16 %v231_v26, %v223_v24  ;;  %v237_v34 = vld [vmem:[#allocation2 + $0x680] sm:$0xff] }
  0x37   :  { %1826 = vmatpush1.bf16.msra.mxu0 %v1825_v46  ;;  %v1843_v33 = vpack.c.bf16 %v246_v28, %v238_v27  ;;  %v245_v35 = vld [vmem:[#allocation2 + $0x6c0] sm:$0xff]  ;;  %v239_v36 = vld [vmem:[#allocation2 + $0x690] sm:$0xff]  ;;  %v1907_v37 = vpack.c.bf16 %v248_v30, %v240_v29  ;;  %v254_v39 = vld [vmem:[#allocation2 + $0x708] sm:$0xff] }
  0x38   :  { %1890 = vmatpush1.bf16.msra.mxu1 %v1889_v47  ;;  %1828 = vmatprep.subr.bf16.mxu0 %v1827_v48  ;;  %v247_v38 = vld [vmem:[#allocation2 + $0x6d0] sm:$0xff]  ;;  %v262_v40 = vld [vmem:[#allocation2 + $0x748] sm:$0xff]  ;;  %v256_v41 = vld [vmem:[#allocation2 + $0x718] sm:$0xff]  ;;  %v1845_v43 = vpack.c.bf16 %v245_v35, %v237_v34 }
  0x39   :  { %1892 = vmatprep.subr.bf16.mxu1 %v1891_v52  ;;  %v264_v42 = vld [vmem:[#allocation2 + $0x758] sm:$0xff]  ;;  %v1909_v44 = vpack.c.bf16 %v247_v38, %v239_v36  ;;  %v1847_v45 = vpack.c.bf16 %v262_v40, %v254_v39  ;;  %v253_v46 = vld [vmem:[#allocation2 + $0x700] sm:$0xff]  ;;  %v255_v48 = vld [vmem:[#allocation2 + $0x710] sm:$0xff] }
  0x3a   :  { %v261_v47 = vld [vmem:[#allocation2 + $0x740] sm:$0xff]  ;;  %v1911_v49 = vpack.c.bf16 %v264_v42, %v256_v41  ;;  %v263_v50 = vld [vmem:[#allocation2 + $0x750] sm:$0xff]  ;;  %v270_v51 = vld [vmem:[#allocation2 + $0x788] sm:$0xff] }
  0x3b   :  { %1830 = vmatpush1.bf16.msra.mxu0 %v1829_v58  ;;  %v278_v52 = vld [vmem:[#allocation2 + $0x7c8] sm:$0xff]  ;;  %v272_v53 = vld [vmem:[#allocation2 + $0x798] sm:$0xff]  ;;  %v1849_v55 = vpack.c.bf16 %v261_v47, %v253_v46  ;;  %v1913_v56 = vpack.c.bf16 %v263_v50, %v255_v48  ;;  %v269_v58 = vld [vmem:[#allocation2 + $0x780] sm:$0xff] }
  0x3c   :  { %1894 = vmatpush1.bf16.msra.mxu1 %v1893_v59  ;;  %1832 = vmatprep.subr.bf16.mxu0 %v1831_v60  ;;  %v280_v54 = vld [vmem:[#allocation2 + $0x7d8] sm:$0xff]  ;;  %v1851_v57 = vpack.c.bf16 %v278_v52, %v270_v51  ;;  %v277_v59 = vld [vmem:[#allocation2 + $0x7c0] sm:$0xff]  ;;  %v271_v60 = vld [vmem:[#allocation2 + $0x790] sm:$0xff] }
  0x3d   :  { %1896 = vmatprep.subr.bf16.mxu1 %v1895_v0  ;;  %v1915_v61 = vpack.c.bf16 %v280_v54, %v272_v53  ;;  %v279_v62 = vld [vmem:[#allocation2 + $0x7d0] sm:$0xff]  ;;  %v34_v63 = vld [vmem:[#allocation2 + $0x28] sm:$0xff]  ;;  %v36_v1 = vld [vmem:[#allocation2 + $0x38] sm:$0xff]  ;;  %v1853_v3 = vpack.c.bf16 %v277_v59, %v269_v58 }
  0x3e   :  { %v42_v0 = vld [vmem:[#allocation2 + $0x68] sm:$0xff]  ;;  %v44_v2 = vld [vmem:[#allocation2 + $0x78] sm:$0xff]  ;;  %v1917_v4 = vpack.c.bf16 %v279_v62, %v271_v60  ;;  %v41_v7 = vld [vmem:[#allocation2 + $0x60] sm:$0xff] }
  0x3f   :  { %1834 = vmatpush1.bf16.msra.mxu0 %v1833_v6  ;;  %v1919_v5 = vpack.c.bf16 %v42_v0, %v34_v63  ;;  %v33_v6 = vld [vmem:[#allocation2 + $0x20] sm:$0xff]  ;;  %v43_v10 = vld [vmem:[#allocation2 + $0x70] sm:$0xff]  ;;  %v50_v11 = vld [vmem:[#allocation2 + $0xa8] sm:$0xff] }
  0x40   :  { %1898 = vmatpush1.bf16.msra.mxu1 %v1897_v8  ;;  %1836 = vmatprep.subr.bf16.mxu0 %v1835_v9  ;;  %v35_v8 = vld [vmem:[#allocation2 + $0x30] sm:$0xff]  ;;  %v1983_v9 = vpack.c.bf16 %v44_v2, %v36_v1  ;;  %v58_v12 = vld [vmem:[#allocation2 + $0xe8] sm:$0xff]  ;;  %v60_v14 = vld [vmem:[#allocation2 + $0xf8] sm:$0xff]  ;;  %v1921_v17 = vpack.c.bf16 %v41_v7, %v33_v6 }
  0x41   :  { %1900 = vmatprep.subr.bf16.mxu1 %v1899_v13  ;;  %v52_v13 = vld [vmem:[#allocation2 + $0xb8] sm:$0xff]  ;;  %v2569_v15 = vld [vmem:[%s2640_s0] sm:$0xff]  ;;  %v1985_v18 = vpack.c.bf16 %v43_v10, %v35_v8  ;;  %v51_v22 = vld [vmem:[#allocation2 + $0xb0] sm:$0xff] }
  0x42   :  { %v1987_v23 = vpack.c.bf16 %v60_v14, %v52_v13  ;;  %v59_v24 = vld [vmem:[#allocation2 + $0xf0] sm:$0xff]  ;;  %v74_v26 = vld [vmem:[#allocation2 + $0x168] sm:$0xff]  ;;  %v68_v27 = vld [vmem:[#allocation2 + $0x138] sm:$0xff] }
  0x43   :  { %1838 = vmatpush1.bf16.msra.mxu0 %v1837_v19  ;;  %v1923_v19 = vpack.c.bf16 %v58_v12, %v50_v11  ;;  %v76_v28 = vld [vmem:[#allocation2 + $0x178] sm:$0xff]  ;;  %v1989_v30 = vpack.c.bf16 %v59_v24, %v51_v22  ;;  %v67_v34 = vld [vmem:[#allocation2 + $0x130] sm:$0xff]  ;;  %v90_v38 = vld [vmem:[#allocation2 + $0x1e8] sm:$0xff] }
  0x44   :  { %1902 = vmatpush1.bf16.msra.mxu1 %v1901_v20  ;;  %1840 = vmatprep.subr.bf16.mxu0 %v1839_v21  ;;  %v49_v20 = vld [vmem:[#allocation2 + $0xa0] sm:$0xff]  ;;  %v1991_v35 = vpack.c.bf16 %v76_v28, %v68_v27  ;;  %v75_v36 = vld [vmem:[#allocation2 + $0x170] sm:$0xff]  ;;  %v84_v39 = vld [vmem:[#allocation2 + $0x1b8] sm:$0xff] }
  0x45   :  { %1904 = vmatprep.subr.bf16.mxu1 %v1903_v25  ;;  %v57_v21 = vld [vmem:[#allocation2 + $0xe0] sm:$0xff]  ;;  %v66_v25 = vld [vmem:[#allocation2 + $0x128] sm:$0xff]  ;;  %v92_v40 = vld [vmem:[#allocation2 + $0x1f8] sm:$0xff]  ;;  %v1993_v42 = vpack.c.bf16 %v75_v36, %v67_v34 }
  0x46   :  { %v1925_v29 = vpack.c.bf16 %v57_v21, %v49_v20  ;;  %v83_v46 = vld [vmem:[#allocation2 + $0x1b0] sm:$0xff]  ;;  %v1995_v47 = vpack.c.bf16 %v92_v40, %v84_v39  ;;  %v106_v50 = vld [vmem:[#allocation2 + $0x268] sm:$0xff]  ;;  %v100_v51 = vld [vmem:[#allocation2 + $0x238] sm:$0xff] }
  0x47   :  { %1842 = vmatpush1.bf16.msra.mxu0 %v1841_v31  ;;  %v1927_v31 = vpack.c.bf16 %v74_v26, %v66_v25  ;;  %v91_v48 = vld [vmem:[#allocation2 + $0x1f0] sm:$0xff]  ;;  %v108_v52 = vld [vmem:[#allocation2 + $0x278] sm:$0xff]  ;;  %v114_v60 = vld [vmem:[#allocation2 + $0x2a8] sm:$0xff] }
  0x48   :  { %1906 = vmatpush1.bf16.msra.mxu1 %v1905_v32  ;;  %1844 = vmatprep.subr.bf16.mxu0 %v1843_v33  ;;  %v65_v32 = vld [vmem:[#allocation2 + $0x120] sm:$0xff]  ;;  %v1999_v58 = vpack.c.bf16 %v108_v52, %v100_v51  ;;  %v107_v59 = vld [vmem:[#allocation2 + $0x270] sm:$0xff]  ;;  %v116_v62 = vld [vmem:[#allocation2 + $0x2b8] sm:$0xff] }
  0x49   :  { %1908 = vmatprep.subr.bf16.mxu1 %v1907_v37  ;;  %v73_v33 = vld [vmem:[#allocation2 + $0x160] sm:$0xff]  ;;  %v82_v37 = vld [vmem:[#allocation2 + $0x1a8] sm:$0xff]  ;;  %v124_v63 = vld [vmem:[#allocation2 + $0x2f8] sm:$0xff] }
  0x4a   :  { %v1929_v41 = vpack.c.bf16 %v73_v33, %v65_v32  ;;  %v2003_v6 = vpack.c.bf16 %v124_v63, %v116_v62  ;;  %v123_v7 = vld [vmem:[#allocation2 + $0x2f0] sm:$0xff]  ;;  %v130_v8 = vld [vmem:[#allocation2 + $0x328] sm:$0xff]  ;;  %v132_v10 = vld [vmem:[#allocation2 + $0x338] sm:$0xff] }
  0x4b   :  { %1846 = vmatpush1.bf16.msra.mxu0 %v1845_v43  ;;  %v1931_v43 = vpack.c.bf16 %v90_v38, %v82_v37  ;;  %v140_v11 = vld [vmem:[#allocation2 + $0x378] sm:$0xff]  ;;  %v139_v21 = vld [vmem:[#allocation2 + $0x370] sm:$0xff]  ;;  %v146_v22 = vld [vmem:[#allocation2 + $0x3a8] sm:$0xff] }
  0x4c   :  { %1910 = vmatpush1.bf16.msra.mxu1 %v1909_v44  ;;  %1848 = vmatprep.subr.bf16.mxu0 %v1847_v45  ;;  %v81_v44 = vld [vmem:[#allocation2 + $0x1a0] sm:$0xff]  ;;  %v2007_v20 = vpack.c.bf16 %v140_v11, %v132_v10  ;;  %v148_v24 = vld [vmem:[#allocation2 + $0x3b8] sm:$0xff]  ;;  %v155_v33 = vld [vmem:[#allocation2 + $0x3f0] sm:$0xff] }
  0x4d   :  { %1912 = vmatprep.subr.bf16.mxu1 %v1911_v49  ;;  %v89_v45 = vld [vmem:[#allocation2 + $0x1e0] sm:$0xff]  ;;  %v98_v49 = vld [vmem:[#allocation2 + $0x228] sm:$0xff]  ;;  %v156_v25 = vld [vmem:[#allocation2 + $0x3f8] sm:$0xff] }
  0x4e   :  { %v1933_v53 = vpack.c.bf16 %v89_v45, %v81_v44  ;;  %v1935_v54 = vpack.c.bf16 %v106_v50, %v98_v49  ;;  %v2011_v32 = vpack.c.bf16 %v156_v25, %v148_v24  ;;  %v162_v34 = vld [vmem:[#allocation2 + $0x428] sm:$0xff]  ;;  %v164_v36 = vld [vmem:[#allocation2 + $0x438] sm:$0xff]  ;;  %v171_v45 = vld [vmem:[#allocation2 + $0x470] sm:$0xff] }
  0x4f   :  { %1850 = vmatpush1.bf16.msra.mxu0 %v1849_v55  ;;  %v97_v55 = vld [vmem:[#allocation2 + $0x220] sm:$0xff]  ;;  %v172_v37 = vld [vmem:[#allocation2 + $0x478] sm:$0xff] }
  0x50   :  { %1914 = vmatpush1.bf16.msra.mxu1 %v1913_v56  ;;  %1852 = vmatprep.subr.bf16.mxu0 %v1851_v57  ;;  %v105_v56 = vld [vmem:[#allocation2 + $0x260] sm:$0xff]  ;;  %v99_v57 = vld [vmem:[#allocation2 + $0x230] sm:$0xff]  ;;  %v2015_v44 = vpack.c.bf16 %v172_v37, %v164_v36  ;;  %v188_v49 = vld [vmem:[#allocation2 + $0x4f8] sm:$0xff] }
  0x51   :  { %1916 = vmatprep.subr.bf16.mxu1 %v1915_v61  ;;  %v122_v61 = vld [vmem:[#allocation2 + $0x2e8] sm:$0xff]  ;;  %v1937_v0 = vpack.c.bf16 %v105_v56, %v97_v55  ;;  %v2001_v1 = vpack.c.bf16 %v107_v59, %v99_v57  ;;  %v187_v56 = vld [vmem:[#allocation2 + $0x4f0] sm:$0xff]  ;;  %v196_v59 = vld [vmem:[#allocation2 + $0x538] sm:$0xff] }
  0x52   :  { %v1939_v2 = vpack.c.bf16 %v122_v61, %v114_v60  ;;  %v194_v57 = vld [vmem:[#allocation2 + $0x528] sm:$0xff]  ;;  %v204_v60 = vld [vmem:[#allocation2 + $0x578] sm:$0xff] }
  0x53   :  { %1854 = vmatpush1.bf16.msra.mxu0 %v1853_v3  ;;  %v113_v3 = vld [vmem:[#allocation2 + $0x2a0] sm:$0xff] }
  0x54   :  { %1918 = vmatpush1.bf16.msra.mxu1 %v1917_v4  ;;  %1920 = vmatprep.subr.bf16.mxu0 %v1919_v5  ;;  %v121_v4 = vld [vmem:[#allocation2 + $0x2e0] sm:$0xff]  ;;  %v115_v5 = vld [vmem:[#allocation2 + $0x2b0] sm:$0xff] }
  0x55   :  { %1984 = vmatprep.subr.bf16.mxu1 %v1983_v9  ;;  %v138_v9 = vld [vmem:[#allocation2 + $0x368] sm:$0xff]  ;;  %v1941_v12 = vpack.c.bf16 %v121_v4, %v113_v3  ;;  %v2005_v13 = vpack.c.bf16 %v123_v7, %v115_v5  ;;  %v2023_v3 = vpack.c.bf16 %v204_v60, %v196_v59  ;;  %v203_v4 = vld [vmem:[#allocation2 + $0x570] sm:$0xff]  ;;  %v212_v7 = vld [vmem:[#allocation2 + $0x5b8] sm:$0xff] }
  0x56   :  { %395 = vmatmul.mubr.f32.vlgmr.msra.gmra.mrb[0].mxu0 %v2569_v15  ;;  %v1943_v14 = vpack.c.bf16 %v138_v9, %v130_v8  ;;  %v210_v5 = vld [vmem:[#allocation2 + $0x5a8] sm:$0xff]  ;;  %v220_v8 = vld [vmem:[#allocation2 + $0x5f8] sm:$0xff] }
  0x57   :  { %466 = vmatmul.mubr.f32.vlgmr.msra.gmra.mrb[0].mxu1 %v2569_v15  ;;  %1922 = vmatpush1.bf16.msra.mxu0 %v1921_v17  ;;  %v129_v17 = vld [vmem:[#allocation2 + $0x320] sm:$0xff] }
  0x58   :  { %1986 = vmatpush1.bf16.msra.mxu1 %v1985_v18  ;;  %1924 = vmatprep.subr.bf16.mxu0 %v1923_v19  ;;  %v137_v18 = vld [vmem:[#allocation2 + $0x360] sm:$0xff]  ;;  %v131_v19 = vld [vmem:[#allocation2 + $0x330] sm:$0xff] }
  0x59   :  { %1988 = vmatprep.subr.bf16.mxu1 %v1987_v23  ;;  %536 = vmatprep.mubr.f32.mxu0 %v2562_v16  ;;  %v154_v23 = vld [vmem:[#allocation2 + $0x3e8] sm:$0xff]  ;;  %v1945_v26 = vpack.c.bf16 %v137_v18, %v129_v17  ;;  %v2009_v27 = vpack.c.bf16 %v139_v21, %v131_v19  ;;  %v2027_v17 = vpack.c.bf16 %v220_v8, %v212_v7  ;;  %v219_v18 = vld [vmem:[#allocation2 + $0x5f0] sm:$0xff]  ;;  %v228_v21 = vld [vmem:[#allocation2 + $0x638] sm:$0xff] }
  0x5a   :  { %607 = vmatprep.mubr.f32.mxu1 %v2562_v16  ;;  %v1997_v16 = vpack.c.bf16 %v91_v48, %v83_v46  ;;  %v1947_v28 = vpack.c.bf16 %v154_v23, %v146_v22  ;;  %v178_v46 = vld [vmem:[#allocation2 + $0x4a8] sm:$0xff]  ;;  %v180_v48 = vld [vmem:[#allocation2 + $0x4b8] sm:$0xff] }
  0x5b   :  { %1926 = vmatpush1.bf16.msra.mxu0 %v1925_v29  ;;  %v145_v29 = vld [vmem:[#allocation2 + $0x3a0] sm:$0xff]  ;;  %v2019_v55 = vpack.c.bf16 %v188_v49, %v180_v48  ;;  %v226_v19 = vld [vmem:[#allocation2 + $0x628] sm:$0xff]  ;;  %v236_v22 = vld [vmem:[#allocation2 + $0x678] sm:$0xff] }
  0x5c   :  { %1990 = vmatpush1.bf16.msra.mxu1 %v1989_v30  ;;  %1928 = vmatprep.subr.bf16.mxu0 %v1927_v31  ;;  %v153_v30 = vld [vmem:[#allocation2 + $0x3e0] sm:$0xff]  ;;  %v147_v31 = vld [vmem:[#allocation2 + $0x3b0] sm:$0xff]  ;;  %v639_v8 = vld [vmem:[#allocation2 + $0x858] sm:$0xff] }
  0x5d   :  { %1992 = vmatprep.subr.bf16.mxu1 %v1991_v35  ;;  %v170_v35 = vld [vmem:[#allocation2 + $0x468] sm:$0xff]  ;;  %v1949_v38 = vpack.c.bf16 %v153_v30, %v145_v29  ;;  %v2013_v39 = vpack.c.bf16 %v155_v33, %v147_v31  ;;  %v2031_v29 = vpack.c.bf16 %v236_v22, %v228_v21  ;;  %v235_v30 = vld [vmem:[#allocation2 + $0x670] sm:$0xff]  ;;  %v244_v33 = vld [vmem:[#allocation2 + $0x6b8] sm:$0xff] }
  0x5e   :  { %v1951_v40 = vpack.c.bf16 %v170_v35, %v162_v34  ;;  %v242_v31 = vld [vmem:[#allocation2 + $0x6a8] sm:$0xff]  ;;  %v252_v34 = vld [vmem:[#allocation2 + $0x6f8] sm:$0xff] }
  0x5f   :  { %1930 = vmatpush1.bf16.msra.mxu0 %v1929_v41  ;;  %v161_v41 = vld [vmem:[#allocation2 + $0x420] sm:$0xff]  ;;  %v655_v21 = vld [vmem:[#allocation2 + $0x8d8] sm:$0xff] }
  0x60   :  { %1994 = vmatpush1.bf16.msra.mxu1 %v1993_v42  ;;  %1932 = vmatprep.subr.bf16.mxu0 %v1931_v43  ;;  %v169_v42 = vld [vmem:[#allocation2 + $0x460] sm:$0xff]  ;;  %v163_v43 = vld [vmem:[#allocation2 + $0x430] sm:$0xff] }
  0x61   :  { %1996 = vmatprep.subr.bf16.mxu1 %v1995_v47  ;;  %v186_v47 = vld [vmem:[#allocation2 + $0x4e8] sm:$0xff]  ;;  %v1953_v50 = vpack.c.bf16 %v169_v42, %v161_v41  ;;  %v2017_v51 = vpack.c.bf16 %v171_v45, %v163_v43  ;;  %v2035_v41 = vpack.c.bf16 %v252_v34, %v244_v33  ;;  %v251_v42 = vld [vmem:[#allocation2 + $0x6f0] sm:$0xff]  ;;  %v260_v45 = vld [vmem:[#allocation2 + $0x738] sm:$0xff] }
  0x62   :  { %v1955_v52 = vpack.c.bf16 %v186_v47, %v178_v46  ;;  %v258_v43 = vld [vmem:[#allocation2 + $0x728] sm:$0xff]  ;;  %v268_v46 = vld [vmem:[#allocation2 + $0x778] sm:$0xff]  ;;  %v660_v34 = vld [vmem:[#allocation2 + $0x900] sm:$0xff] }
  0x63   :  { %1934 = vmatpush1.bf16.msra.mxu0 %v1933_v53  ;;  %v177_v53 = vld [vmem:[#allocation2 + $0x4a0] sm:$0xff]  ;;  %v671_v33 = vld [vmem:[#allocation2 + $0x958] sm:$0xff] }
  0x64   :  { %1998 = vmatpush1.bf16.msra.mxu1 %v1997_v16  ;;  %1936 = vmatprep.subr.bf16.mxu0 %v1935_v54  ;;  %v185_v16 = vld [vmem:[#allocation2 + $0x4e0] sm:$0xff]  ;;  %v179_v54 = vld [vmem:[#allocation2 + $0x4b0] sm:$0xff] }
  0x65   :  { %2000 = vmatprep.subr.bf16.mxu1 %v1999_v58  ;;  %v202_v58 = vld [vmem:[#allocation2 + $0x568] sm:$0xff]  ;;  %v1957_v61 = vpack.c.bf16 %v185_v16, %v177_v53  ;;  %v2021_v62 = vpack.c.bf16 %v187_v56, %v179_v54  ;;  %v2039_v53 = vpack.c.bf16 %v268_v46, %v260_v45  ;;  %v267_v16 = vld [vmem:[#allocation2 + $0x770] sm:$0xff]  ;;  %v276_v56 = vld [vmem:[#allocation2 + $0x7b8] sm:$0xff] }
  0x66   :  { %v1959_v63 = vpack.c.bf16 %v202_v58, %v194_v57  ;;  %v274_v54 = vld [vmem:[#allocation2 + $0x7a8] sm:$0xff]  ;;  %v284_v57 = vld [vmem:[#allocation2 + $0x7f8] sm:$0xff]  ;;  %v676_v46 = vld [vmem:[#allocation2 + $0x980] sm:$0xff] }
  0x67   :  { %1938 = vmatpush1.bf16.msra.mxu0 %v1937_v0  ;;  %v193_v0 = vld [vmem:[#allocation2 + $0x520] sm:$0xff]  ;;  %v687_v45 = vld [vmem:[#allocation2 + $0x9d8] sm:$0xff] }
  0x68   :  { %2002 = vmatpush1.bf16.msra.mxu1 %v2001_v1  ;;  %1940 = vmatprep.subr.bf16.mxu0 %v1939_v2  ;;  %v201_v1 = vld [vmem:[#allocation2 + $0x560] sm:$0xff]  ;;  %v195_v2 = vld [vmem:[#allocation2 + $0x530] sm:$0xff] }
  0x69   :  { %2004 = vmatprep.subr.bf16.mxu1 %v2003_v6  ;;  %v218_v6 = vld [vmem:[#allocation2 + $0x5e8] sm:$0xff]  ;;  %v1961_v9 = vpack.c.bf16 %v201_v1, %v193_v0  ;;  %v2025_v10 = vpack.c.bf16 %v203_v4, %v195_v2  ;;  %v275_v0 = vld [vmem:[#allocation2 + $0x7b0] sm:$0xff] }
  0x6a   :  { %v1963_v11 = vpack.c.bf16 %v218_v6, %v210_v5  ;;  %v283_v1 = vld [vmem:[#allocation2 + $0x7f0] sm:$0xff]  ;;  %v629_v4 = vld [vmem:[#allocation2 + $0x808] sm:$0xff]  ;;  %v631_v6 = vld [vmem:[#allocation2 + $0x818] sm:$0xff] }
  0x6b   :  { %1942 = vmatpush1.bf16.msra.mxu0 %v1941_v12  ;;  %v209_v12 = vld [vmem:[#allocation2 + $0x5a0] sm:$0xff]  ;;  %v637_v5 = vld [vmem:[#allocation2 + $0x848] sm:$0xff] }
  0x6c   :  { %2006 = vmatpush1.bf16.msra.mxu1 %v2005_v13  ;;  %1944 = vmatprep.subr.bf16.mxu0 %v1943_v14  ;;  %v217_v13 = vld [vmem:[#allocation2 + $0x5e0] sm:$0xff]  ;;  %v211_v14 = vld [vmem:[#allocation2 + $0x5b0] sm:$0xff]  ;;  %v2047_v7 = vpack.c.bf16 %v637_v5, %v629_v4 }
  0x6d   :  { %2008 = vmatprep.subr.bf16.mxu1 %v2007_v20  ;;  %v234_v20 = vld [vmem:[#allocation2 + $0x668] sm:$0xff]  ;;  %v1965_v23 = vpack.c.bf16 %v217_v13, %v209_v12  ;;  %v2029_v24 = vpack.c.bf16 %v219_v18, %v211_v14  ;;  %v630_v13 = vld [vmem:[#allocation2 + $0x810] sm:$0xff]  ;;  %v708_v5 = vld [vmem:[#allocation2 + $0xa80] sm:$0xff] }
  0x6e   :  { %v1967_v25 = vpack.c.bf16 %v234_v20, %v226_v19  ;;  %v638_v14 = vld [vmem:[#allocation2 + $0x850] sm:$0xff]  ;;  %v653_v19 = vld [vmem:[#allocation2 + $0x8c8] sm:$0xff]  ;;  %v647_v20 = vld [vmem:[#allocation2 + $0x898] sm:$0xff] }
  0x6f   :  { %1946 = vmatpush1.bf16.msra.mxu0 %v1945_v26  ;;  %v225_v26 = vld [vmem:[#allocation2 + $0x620] sm:$0xff]  ;;  %v2113_v18 = vpack.c.bf16 %v638_v14, %v630_v13  ;;  %v2115_v22 = vpack.c.bf16 %v655_v21, %v647_v20  ;;  %v735_v13 = vld [vmem:[#allocation2 + $0xb58] sm:$0xff]  ;;  %v726_v21 = vld [vmem:[#allocation2 + $0xb10] sm:$0xff] }
  0x70   :  { %2010 = vmatpush1.bf16.msra.mxu1 %v2009_v27  ;;  %1948 = vmatprep.subr.bf16.mxu0 %v1947_v28  ;;  %v233_v27 = vld [vmem:[#allocation2 + $0x660] sm:$0xff]  ;;  %v227_v28 = vld [vmem:[#allocation2 + $0x630] sm:$0xff] }
  0x71   :  { %2012 = vmatprep.subr.bf16.mxu1 %v2011_v32  ;;  %v250_v32 = vld [vmem:[#allocation2 + $0x6e8] sm:$0xff]  ;;  %v1969_v35 = vpack.c.bf16 %v233_v27, %v225_v26  ;;  %v2033_v36 = vpack.c.bf16 %v235_v30, %v227_v28  ;;  %v654_v27 = vld [vmem:[#allocation2 + $0x8d0] sm:$0xff]  ;;  %v732_v20 = vld [vmem:[#allocation2 + $0xb40] sm:$0xff] }
  0x72   :  { %v1971_v37 = vpack.c.bf16 %v250_v32, %v242_v31  ;;  %v661_v28 = vld [vmem:[#allocation2 + $0x908] sm:$0xff]  ;;  %v663_v32 = vld [vmem:[#allocation2 + $0x918] sm:$0xff] }
  0x73   :  { %1950 = vmatpush1.bf16.msra.mxu0 %v1949_v38  ;;  %v241_v38 = vld [vmem:[#allocation2 + $0x6a0] sm:$0xff] }
  0x74   :  { %2014 = vmatpush1.bf16.msra.mxu1 %v2013_v39  ;;  %1952 = vmatprep.subr.bf16.mxu0 %v1951_v40  ;;  %v249_v39 = vld [vmem:[#allocation2 + $0x6e0] sm:$0xff]  ;;  %v243_v40 = vld [vmem:[#allocation2 + $0x6b0] sm:$0xff] }
  0x75   :  { %2016 = vmatprep.subr.bf16.mxu1 %v2015_v44  ;;  %v266_v44 = vld [vmem:[#allocation2 + $0x768] sm:$0xff]  ;;  %v1973_v47 = vpack.c.bf16 %v249_v39, %v241_v38  ;;  %v2037_v48 = vpack.c.bf16 %v251_v42, %v243_v40  ;;  %v670_v38 = vld [vmem:[#allocation2 + $0x950] sm:$0xff]  ;;  %v679_v42 = vld [vmem:[#allocation2 + $0x998] sm:$0xff] }
  0x76   :  { %v1975_v49 = vpack.c.bf16 %v266_v44, %v258_v43  ;;  %v677_v40 = vld [vmem:[#allocation2 + $0x988] sm:$0xff] }
  0x77   :  { %1954 = vmatpush1.bf16.msra.mxu0 %v1953_v50  ;;  %v257_v50 = vld [vmem:[#allocation2 + $0x720] sm:$0xff] }
  0x78   :  { %2018 = vmatpush1.bf16.msra.mxu1 %v2017_v51  ;;  %1956 = vmatprep.subr.bf16.mxu0 %v1955_v52  ;;  %v265_v51 = vld [vmem:[#allocation2 + $0x760] sm:$0xff]  ;;  %v259_v52 = vld [vmem:[#allocation2 + $0x730] sm:$0xff] }
  0x79   :  { %2020 = vmatprep.subr.bf16.mxu1 %v2019_v55  ;;  %v282_v55 = vld [vmem:[#allocation2 + $0x7e8] sm:$0xff]  ;;  %v1977_v58 = vpack.c.bf16 %v265_v51, %v257_v50  ;;  %v2041_v59 = vpack.c.bf16 %v267_v16, %v259_v52  ;;  %v686_v50 = vld [vmem:[#allocation2 + $0x9d0] sm:$0xff]  ;;  %v703_v16 = vld [vmem:[#allocation2 + $0xa58] sm:$0xff] }
  0x7a   :  { %v1979_v60 = vpack.c.bf16 %v282_v55, %v274_v54  ;;  %v693_v51 = vld [vmem:[#allocation2 + $0xa08] sm:$0xff] }
  0x7b   :  { %1958 = vmatpush1.bf16.msra.mxu0 %v1957_v61  ;;  %v273_v61 = vld [vmem:[#allocation2 + $0x7a0] sm:$0xff]  ;;  %v701_v52 = vld [vmem:[#allocation2 + $0xa48] sm:$0xff] }
  0x7c   :  { %2022 = vmatpush1.bf16.msra.mxu1 %v2021_v62  ;;  %1960 = vmatprep.subr.bf16.mxu0 %v1959_v63  ;;  %v281_v62 = vld [vmem:[#allocation2 + $0x7e0] sm:$0xff]  ;;  %v2043_v63 = vpack.c.bf16 %v284_v57, %v276_v56  ;;  %v2063_v56 = vpack.c.bf16 %v701_v52, %v693_v51 }
  0x7d   :  { %2024 = vmatprep.subr.bf16.mxu1 %v2023_v3  ;;  %v1981_v2 = vpack.c.bf16 %v281_v62, %v273_v61  ;;  %v2045_v3 = vpack.c.bf16 %v283_v1, %v275_v0  ;;  %v692_v57 = vld [vmem:[#allocation2 + $0xa00] sm:$0xff]  ;;  %v702_v61 = vld [vmem:[#allocation2 + $0xa50] sm:$0xff]  ;;  %v709_v62 = vld [vmem:[#allocation2 + $0xa88] sm:$0xff] }
  0x7e   :  { %v711_v0 = vld [vmem:[#allocation2 + $0xa98] sm:$0xff] }
  0x7f   :  { %1962 = vmatpush1.bf16.msra.mxu0 %v1961_v9  ;;  %v628_v9 = vld [vmem:[#allocation2 + $0x800] sm:$0xff]  ;;  %v719_v1 = vld [vmem:[#allocation2 + $0xad8] sm:$0xff] }
  0x80   :  { %2026 = vmatpush1.bf16.msra.mxu1 %v2025_v10  ;;  %1964 = vmatprep.subr.bf16.mxu0 %v1963_v11  ;;  %v636_v10 = vld [vmem:[#allocation2 + $0x840] sm:$0xff]  ;;  %v2111_v11 = vpack.c.bf16 %v639_v8, %v631_v6  ;;  %v2131_v8 = vpack.c.bf16 %v719_v1, %v711_v0 }
  0x81   :  { %2028 = vmatprep.subr.bf16.mxu1 %v2027_v17  ;;  %v2049_v12 = vpack.c.bf16 %v636_v10, %v628_v9  ;;  %v645_v17 = vld [vmem:[#allocation2 + $0x888] sm:$0xff]  ;;  %v716_v6 = vld [vmem:[#allocation2 + $0xac0] sm:$0xff]  ;;  %v718_v9 = vld [vmem:[#allocation2 + $0xad0] sm:$0xff] }
  0x82   :  { %v725_v10 = vld [vmem:[#allocation2 + $0xb08] sm:$0xff]  ;;  %v2069_v14 = vpack.c.bf16 %v716_v6, %v708_v5  ;;  %v788_v1 = vld [vmem:[#allocation2 + $0xd00] sm:$0xff]  ;;  %v798_v5 = vld [vmem:[#allocation2 + $0xd50] sm:$0xff] }
  0x83   :  { %1966 = vmatpush1.bf16.msra.mxu0 %v1965_v23  ;;  %v644_v23 = vld [vmem:[#allocation2 + $0x880] sm:$0xff]  ;;  %v805_v6 = vld [vmem:[#allocation2 + $0xd88] sm:$0xff] }
  0x84   :  { %2030 = vmatpush1.bf16.msra.mxu1 %v2029_v24  ;;  %1968 = vmatprep.subr.bf16.mxu0 %v1967_v25  ;;  %v652_v24 = vld [vmem:[#allocation2 + $0x8c0] sm:$0xff]  ;;  %v646_v25 = vld [vmem:[#allocation2 + $0x890] sm:$0xff] }
  0x85   :  { %2032 = vmatprep.subr.bf16.mxu1 %v2031_v29  ;;  %v2053_v26 = vpack.c.bf16 %v652_v24, %v644_v23  ;;  %v669_v29 = vld [vmem:[#allocation2 + $0x948] sm:$0xff]  ;;  %v2117_v30 = vpack.c.bf16 %v654_v27, %v646_v25  ;;  %v743_v25 = vld [vmem:[#allocation2 + $0xb98] sm:$0xff] }
  0x86   :  { %v2055_v31 = vpack.c.bf16 %v669_v29, %v661_v28  ;;  %v741_v23 = vld [vmem:[#allocation2 + $0xb88] sm:$0xff] }
  0x87   :  { %1970 = vmatpush1.bf16.msra.mxu0 %v1969_v35  ;;  %v2119_v35 = vpack.c.bf16 %v671_v33, %v663_v32  ;;  %v749_v24 = vld [vmem:[#allocation2 + $0xbc8] sm:$0xff]  ;;  %v742_v32 = vld [vmem:[#allocation2 + $0xb90] sm:$0xff] }
  0x88   :  { %2034 = vmatpush1.bf16.msra.mxu1 %v2033_v36  ;;  %1972 = vmatprep.subr.bf16.mxu0 %v1971_v37  ;;  %v668_v36 = vld [vmem:[#allocation2 + $0x940] sm:$0xff]  ;;  %v662_v37 = vld [vmem:[#allocation2 + $0x910] sm:$0xff]  ;;  %v2075_v29 = vpack.c.bf16 %v749_v24, %v741_v23 }
  0x89   :  { %2036 = vmatprep.subr.bf16.mxu1 %v2035_v41  ;;  %v2057_v39 = vpack.c.bf16 %v668_v36, %v660_v34  ;;  %v685_v41 = vld [vmem:[#allocation2 + $0x9c8] sm:$0xff]  ;;  %v2121_v43 = vpack.c.bf16 %v670_v38, %v662_v37  ;;  %v750_v34 = vld [vmem:[#allocation2 + $0xbd0] sm:$0xff]  ;;  %v759_v37 = vld [vmem:[#allocation2 + $0xc18] sm:$0xff] }
  0x8a   :  { %v2059_v44 = vpack.c.bf16 %v685_v41, %v677_v40  ;;  %v765_v36 = vld [vmem:[#allocation2 + $0xc48] sm:$0xff]  ;;  %v767_v38 = vld [vmem:[#allocation2 + $0xc58] sm:$0xff]  ;;  %v2141_v40 = vpack.c.bf16 %v750_v34, %v742_v32 }
  0x8b   :  { %1974 = vmatpush1.bf16.msra.mxu0 %v1973_v47  ;;  %v684_v47 = vld [vmem:[#allocation2 + $0x9c0] sm:$0xff]  ;;  %v845_v32 = vld [vmem:[#allocation2 + $0xec8] sm:$0xff]  ;;  %v847_v34 = vld [vmem:[#allocation2 + $0xed8] sm:$0xff] }
  0x8c   :  { %2038 = vmatpush1.bf16.msra.mxu1 %v2037_v48  ;;  %1976 = vmatprep.subr.bf16.mxu0 %v1975_v49  ;;  %v2123_v48 = vpack.c.bf16 %v687_v45, %v679_v42  ;;  %v678_v49 = vld [vmem:[#allocation2 + $0x990] sm:$0xff]  ;;  %v2061_v54 = vpack.c.bf16 %v684_v47, %v676_v46  ;;  %v756_v42 = vld [vmem:[#allocation2 + $0xc00] sm:$0xff]  ;;  %v2143_v45 = vpack.c.bf16 %v767_v38, %v759_v37  ;;  %v773_v47 = vld [vmem:[#allocation2 + $0xc88] sm:$0xff] }
  0x8d   :  { %2040 = vmatprep.subr.bf16.mxu1 %v2039_v53  ;;  %v695_v53 = vld [vmem:[#allocation2 + $0xa18] sm:$0xff]  ;;  %v2125_v55 = vpack.c.bf16 %v686_v50, %v678_v49  ;;  %v766_v46 = vld [vmem:[#allocation2 + $0xc50] sm:$0xff]  ;;  %v836_v38 = vld [vmem:[#allocation2 + $0xe80] sm:$0xff] }
  0x8e   :  { %v775_v49 = vld [vmem:[#allocation2 + $0xc98] sm:$0xff] }
  0x8f   :  { %1978 = vmatpush1.bf16.msra.mxu0 %v1977_v58  ;;  %v700_v58 = vld [vmem:[#allocation2 + $0xa40] sm:$0xff]  ;;  %v783_v50 = vld [vmem:[#allocation2 + $0xcd8] sm:$0xff] }
  0x90   :  { %2042 = vmatpush1.bf16.msra.mxu1 %v2041_v59  ;;  %1980 = vmatprep.subr.bf16.mxu0 %v1979_v60  ;;  %v694_v59 = vld [vmem:[#allocation2 + $0xa10] sm:$0xff]  ;;  %v2127_v60 = vpack.c.bf16 %v703_v16, %v695_v53  ;;  %v772_v16 = vld [vmem:[#allocation2 + $0xc80] sm:$0xff] }
  0x91   :  { %2044 = vmatprep.subr.bf16.mxu1 %v2043_v63  ;;  %v717_v63 = vld [vmem:[#allocation2 + $0xac8] sm:$0xff] }
  0x92   :  { %v2067_v4 = vpack.c.bf16 %v717_v63, %v709_v62 }
  0x93   :  { %1982 = vmatpush1.bf16.msra.mxu0 %v1981_v2  ;;  %v2065_v2 = vpack.c.bf16 %v700_v58, %v692_v57  ;;  %v782_v57 = vld [vmem:[#allocation2 + $0xcd0] sm:$0xff]  ;;  %v789_v58 = vld [vmem:[#allocation2 + $0xd08] sm:$0xff] }
  0x94   :  { %2046 = vmatpush1.bf16.msra.mxu1 %v2045_v3  ;;  %2048 = vmatprep.subr.bf16.mxu0 %v2047_v7  ;;  %v2129_v3 = vpack.c.bf16 %v702_v61, %v694_v59  ;;  %v710_v7 = vld [vmem:[#allocation2 + $0xa90] sm:$0xff]  ;;  %v797_v59 = vld [vmem:[#allocation2 + $0xd48] sm:$0xff]  ;;  %v799_v61 = vld [vmem:[#allocation2 + $0xd58] sm:$0xff] }
  0x95   :  { %2112 = vmatprep.subr.bf16.mxu1 %v2111_v11  ;;  %v733_v11 = vld [vmem:[#allocation2 + $0xb48] sm:$0xff]  ;;  %v2087_v0 = vpack.c.bf16 %v797_v59, %v789_v58  ;;  %v871_v58 = vld [vmem:[#allocation2 + $0xf98] sm:$0xff] }
  0x96   :  { %537 = vmatmul.mubr.f32.vlgmr.msra.gmra.mrb[2].mxu0 %v2569_v15 }
  0x97   :  { %608 = vmatmul.mubr.f32.vlgmr.msra.gmra.mrb[2].mxu1 %v2569_v15  ;;  %2050 = vmatpush1.bf16.msra.mxu0 %v2049_v12  ;;  %v2051_v15 = vpack.c.bf16 %v653_v19, %v645_v17  ;;  %v727_v12 = vld [vmem:[#allocation2 + $0xb18] sm:$0xff]  ;;  %v2133_v17 = vpack.c.bf16 %v718_v9, %v710_v7  ;;  %v724_v19 = vld [vmem:[#allocation2 + $0xb00] sm:$0xff]  ;;  %v813_v7 = vld [vmem:[#allocation2 + $0xdc8] sm:$0xff] }
  0x98   :  { %2114 = vmatpush1.bf16.msra.mxu1 %v2113_v18  ;;  %v2071_v18 = vpack.c.bf16 %v733_v11, %v725_v10  ;;  %v2073_v27 = vpack.c.bf16 %v732_v20, %v724_v19  ;;  %v815_v9 = vld [vmem:[#allocation2 + $0xdd8] sm:$0xff]  ;;  %v814_v19 = vld [vmem:[#allocation2 + $0xdd0] sm:$0xff]  ;;  %v821_v20 = vld [vmem:[#allocation2 + $0xe08] sm:$0xff] }
  0x99   :  { %2052 = vmatprep.subr.bf16.mxu0 %v2051_v15  ;;  %2116 = vmatprep.subr.bf16.mxu1 %v2115_v22  ;;  %v2135_v15 = vpack.c.bf16 %v735_v13, %v727_v12  ;;  %v734_v22 = vld [vmem:[#allocation2 + $0xb50] sm:$0xff]  ;;  %v2091_v12 = vpack.c.bf16 %v813_v7, %v805_v6  ;;  %v804_v13 = vld [vmem:[#allocation2 + $0xd80] sm:$0xff]  ;;  %v635_v6 = vld [vmem:[#allocation2 + $0x838] sm:$0xff] }
  0x9a   :  { %v2137_v28 = vpack.c.bf16 %v734_v22, %v726_v21  ;;  %v829_v21 = vld [vmem:[#allocation2 + $0xe48] sm:$0xff]  ;;  %v831_v22 = vld [vmem:[#allocation2 + $0xe58] sm:$0xff] }
  0x9b   :  { %2054 = vmatpush1.bf16.msra.mxu0 %v2053_v26  ;;  %v751_v26 = vld [vmem:[#allocation2 + $0xbd8] sm:$0xff] }
  0x9c   :  { %2118 = vmatpush1.bf16.msra.mxu1 %v2117_v30  ;;  %2056 = vmatprep.subr.bf16.mxu0 %v2055_v31  ;;  %v740_v30 = vld [vmem:[#allocation2 + $0xb80] sm:$0xff]  ;;  %v2139_v33 = vpack.c.bf16 %v751_v26, %v743_v25  ;;  %v2095_v25 = vpack.c.bf16 %v829_v21, %v821_v20 }
  0x9d   :  { %2120 = vmatprep.subr.bf16.mxu1 %v2119_v35  ;;  %v748_v31 = vld [vmem:[#allocation2 + $0xbc0] sm:$0xff]  ;;  %v757_v35 = vld [vmem:[#allocation2 + $0xc08] sm:$0xff] }
  0x9e   :  { %v2079_v41 = vpack.c.bf16 %v765_v36, %v757_v35  ;;  %v820_v26 = vld [vmem:[#allocation2 + $0xe00] sm:$0xff] }
  0x9f   :  { %2058 = vmatpush1.bf16.msra.mxu0 %v2057_v39  ;;  %v2077_v39 = vpack.c.bf16 %v748_v31, %v740_v30  ;;  %v830_v30 = vld [vmem:[#allocation2 + $0xe50] sm:$0xff]  ;;  %v837_v31 = vld [vmem:[#allocation2 + $0xe88] sm:$0xff] }
  0xa0   :  { %2122 = vmatpush1.bf16.msra.mxu1 %v2121_v43  ;;  %2060 = vmatprep.subr.bf16.mxu0 %v2059_v44  ;;  %v764_v43 = vld [vmem:[#allocation2 + $0xc40] sm:$0xff]  ;;  %v758_v44 = vld [vmem:[#allocation2 + $0xc10] sm:$0xff]  ;;  %v2099_v37 = vpack.c.bf16 %v845_v32, %v837_v31 }
  0xa1   :  { %2124 = vmatprep.subr.bf16.mxu1 %v2123_v48  ;;  %v781_v48 = vld [vmem:[#allocation2 + $0xcc8] sm:$0xff]  ;;  %v2081_v51 = vpack.c.bf16 %v764_v43, %v756_v42  ;;  %v2145_v52 = vpack.c.bf16 %v766_v46, %v758_v44  ;;  %v846_v42 = vld [vmem:[#allocation2 + $0xed0] sm:$0xff] }
  0xa2   :  { %v2083_v53 = vpack.c.bf16 %v781_v48, %v773_v47  ;;  %v861_v46 = vld [vmem:[#allocation2 + $0xf48] sm:$0xff]  ;;  %v855_v47 = vld [vmem:[#allocation2 + $0xf18] sm:$0xff] }
  0xa3   :  { %2062 = vmatpush1.bf16.msra.mxu0 %v2061_v54  ;;  %v780_v54 = vld [vmem:[#allocation2 + $0xcc0] sm:$0xff] }
  0xa4   :  { %2126 = vmatpush1.bf16.msra.mxu1 %v2125_v55  ;;  %2064 = vmatprep.subr.bf16.mxu0 %v2063_v56  ;;  %v774_v55 = vld [vmem:[#allocation2 + $0xc90] sm:$0xff]  ;;  %v2147_v56 = vpack.c.bf16 %v783_v50, %v775_v49  ;;  %v2085_v62 = vpack.c.bf16 %v780_v54, %v772_v16  ;;  %v863_v49 = vld [vmem:[#allocation2 + $0xf58] sm:$0xff]  ;;  %v852_v50 = vld [vmem:[#allocation2 + $0xf00] sm:$0xff] }
  0xa5   :  { %2128 = vmatprep.subr.bf16.mxu1 %v2127_v60  ;;  %v791_v60 = vld [vmem:[#allocation2 + $0xd18] sm:$0xff]  ;;  %v2149_v63 = vpack.c.bf16 %v782_v57, %v774_v55  ;;  %v854_v16 = vld [vmem:[#allocation2 + $0xf10] sm:$0xff]  ;;  %v877_v57 = vld [vmem:[#allocation2 + $0xfc8] sm:$0xff] }
  0xa6   :  { %v862_v54 = vld [vmem:[#allocation2 + $0xf50] sm:$0xff] }
  0xa7   :  { %2066 = vmatpush1.bf16.msra.mxu0 %v2065_v2  ;;  %v796_v2 = vld [vmem:[#allocation2 + $0xd40] sm:$0xff]  ;;  %v2169_v55 = vpack.c.bf16 %v862_v54, %v854_v16 }
  0xa8   :  { %2130 = vmatpush1.bf16.msra.mxu1 %v2129_v3  ;;  %2068 = vmatprep.subr.bf16.mxu0 %v2067_v4  ;;  %v790_v3 = vld [vmem:[#allocation2 + $0xd10] sm:$0xff]  ;;  %v2151_v4 = vpack.c.bf16 %v799_v61, %v791_v60  ;;  %v2089_v10 = vpack.c.bf16 %v796_v2, %v788_v1  ;;  %v879_v60 = vld [vmem:[#allocation2 + $0xfd8] sm:$0xff]  ;;  %v868_v61 = vld [vmem:[#allocation2 + $0xf80] sm:$0xff] }
  0xa9   :  { %2132 = vmatprep.subr.bf16.mxu1 %v2131_v8  ;;  %v807_v8 = vld [vmem:[#allocation2 + $0xd98] sm:$0xff]  ;;  %v2153_v11 = vpack.c.bf16 %v798_v5, %v790_v3  ;;  %v870_v1 = vld [vmem:[#allocation2 + $0xf90] sm:$0xff]  ;;  %v641_v5 = vld [vmem:[#allocation2 + $0x868] sm:$0xff] }
  0xaa   :  { %v878_v2 = vld [vmem:[#allocation2 + $0xfd0] sm:$0xff] }
  0xab   :  { %2070 = vmatpush1.bf16.msra.mxu0 %v2069_v14  ;;  %v812_v14 = vld [vmem:[#allocation2 + $0xdc0] sm:$0xff]  ;;  %v2173_v3 = vpack.c.bf16 %v878_v2, %v870_v1  ;;  %v657_v1 = vld [vmem:[#allocation2 + $0x8e8] sm:$0xff]  ;;  %v651_v2 = vld [vmem:[#allocation2 + $0x8b8] sm:$0xff] }
  0xac   :  { %2134 = vmatpush1.bf16.msra.mxu1 %v2133_v17  ;;  %2072 = vmatprep.subr.bf16.mxu0 %v2071_v18  ;;  %v806_v17 = vld [vmem:[#allocation2 + $0xd90] sm:$0xff]  ;;  %v2155_v18 = vpack.c.bf16 %v815_v9, %v807_v8  ;;  %v2093_v23 = vpack.c.bf16 %v812_v14, %v804_v13  ;;  %v643_v8 = vld [vmem:[#allocation2 + $0x878] sm:$0xff] }
  0xad   :  { %2136 = vmatprep.subr.bf16.mxu1 %v2135_v15  ;;  %v823_v15 = vld [vmem:[#allocation2 + $0xe18] sm:$0xff]  ;;  %v2157_v24 = vpack.c.bf16 %v814_v19, %v806_v17  ;;  %v2239_v9 = vpack.c.bf16 %v643_v8, %v635_v6  ;;  %v656_v8 = vld [vmem:[#allocation2 + $0x8e0] sm:$0xff] }
  0xae   :  { %v287_v13 = vld [vmem:[#allocation2 + $0x1800] ss:$8 sm:$0xf0] }
  0xaf   :  { %2074 = vmatpush1.bf16.msra.mxu0 %v2073_v27  ;;  %v828_v27 = vld [vmem:[#allocation2 + $0xe40] sm:$0xff] }
  0xb0   :  { %2138 = vmatpush1.bf16.msra.mxu1 %v2137_v28  ;;  %2076 = vmatprep.subr.bf16.mxu0 %v2075_v29  ;;  %v822_v28 = vld [vmem:[#allocation2 + $0xe10] sm:$0xff]  ;;  %v2159_v29 = vpack.c.bf16 %v831_v22, %v823_v15  ;;  %v2097_v35 = vpack.c.bf16 %v828_v27, %v820_v26 }
  0xb1   :  { %2140 = vmatprep.subr.bf16.mxu1 %v2139_v33  ;;  %v839_v33 = vld [vmem:[#allocation2 + $0xe98] sm:$0xff]  ;;  %v2161_v36 = vpack.c.bf16 %v830_v30, %v822_v28 }
  0xb3   :  { %2078 = vmatpush1.bf16.msra.mxu0 %v2077_v39  ;;  %v844_v39 = vld [vmem:[#allocation2 + $0xec0] sm:$0xff] }
  0xb4   :  { %2142 = vmatpush1.bf16.msra.mxu1 %v2141_v40  ;;  %2080 = vmatprep.subr.bf16.mxu0 %v2079_v41  ;;  %v2163_v40 = vpack.c.bf16 %v847_v34, %v839_v33  ;;  %v838_v41 = vld [vmem:[#allocation2 + $0xe90] sm:$0xff]  ;;  %v2101_v43 = vpack.c.bf16 %v844_v39, %v836_v38 }
  0xb5   :  { %2144 = vmatprep.subr.bf16.mxu1 %v2143_v45  ;;  %v2165_v44 = vpack.c.bf16 %v846_v42, %v838_v41  ;;  %v853_v45 = vld [vmem:[#allocation2 + $0xf08] sm:$0xff] }
  0xb6   :  { %v2103_v48 = vpack.c.bf16 %v861_v46, %v853_v45 }
  0xb7   :  { %2082 = vmatpush1.bf16.msra.mxu0 %v2081_v51  ;;  %v860_v51 = vld [vmem:[#allocation2 + $0xf40] sm:$0xff] }
  0xb8   :  { %2146 = vmatpush1.bf16.msra.mxu1 %v2145_v52  ;;  %2084 = vmatprep.subr.bf16.mxu0 %v2083_v53  ;;  %v2167_v52 = vpack.c.bf16 %v863_v49, %v855_v47  ;;  %v2105_v53 = vpack.c.bf16 %v860_v51, %v852_v50 }
  0xb9   :  { %2148 = vmatprep.subr.bf16.mxu1 %v2147_v56  ;;  %v869_v56 = vld [vmem:[#allocation2 + $0xf88] sm:$0xff] }
  0xba   :  { %v2107_v59 = vpack.c.bf16 %v877_v57, %v869_v56  ;;  %v632_v57 = vld [vmem:[#allocation2 + $0x820] sm:$0xff] }
  0xbb   :  { %2086 = vmatpush1.bf16.msra.mxu0 %v2085_v62  ;;  %v876_v62 = vld [vmem:[#allocation2 + $0xfc0] sm:$0xff] }
  0xbc   :  { %2150 = vmatpush1.bf16.msra.mxu1 %v2149_v63  ;;  %2088 = vmatprep.subr.bf16.mxu0 %v2087_v0  ;;  %v2171_v63 = vpack.c.bf16 %v879_v60, %v871_v58  ;;  %v2109_v0 = vpack.c.bf16 %v876_v62, %v868_v61  ;;  %v634_v60 = vld [vmem:[#allocation2 + $0x830] sm:$0xff] }
  0xbd   :  { %2152 = vmatprep.subr.bf16.mxu1 %v2151_v4  ;;  %v633_v4 = vld [vmem:[#allocation2 + $0x828] sm:$0xff]  ;;  %v642_v61 = vld [vmem:[#allocation2 + $0x870] sm:$0xff] }
  0xbe   :  { %v2175_v7 = vpack.c.bf16 %v641_v5, %v633_v4  ;;  %v2241_v6 = vpack.c.bf16 %v642_v61, %v634_v60  ;;  %v715_v60 = vld [vmem:[#allocation2 + $0xab8] sm:$0xff] }
  0xbf   :  { %2090 = vmatpush1.bf16.msra.mxu0 %v2089_v10  ;;  %v290_v10 = vlaneseq  ;;  %v723_v61 = vld [vmem:[#allocation2 + $0xaf8] sm:$0xff] }
  0xc0   :  { %2154 = vmatpush1.bf16.msra.mxu1 %v2153_v11  ;;  %2092 = vmatprep.subr.bf16.mxu0 %v2091_v12  ;;  %v286_v12 = vld [vmem:[#allocation2 + $0x1800] ss:$8 sm:$0xf] }
  0xc1   :  { %2156 = vmatprep.subr.bf16.mxu1 %v2155_v18  ;;  %v2577_v11 = vshrl.u32 %v290_v10, 7  ;;  %v288_v14 = vor.u32 %v287_v13, %v286_v12  ;;  %v658_v10 = vld [vmem:[#allocation2 + $0x8f0] sm:$0xff]  ;;  %v665_v12 = vld [vmem:[#allocation2 + $0x928] sm:$0xff] }
  0xc3   :  { %2094 = vmatpush1.bf16.msra.mxu0 %v2093_v23  ;;  %v2580_v17 = vsub.s32 0, %v2577_v11  ;;  %v300_v18 = vsub.s32 2, %v2577_v11  ;;  %v2584_v19 = vsub.s32 1, %v2577_v11  ;;  %v304_v20 = vsub.s32 3, %v2577_v11 }
  0xc4   :  { %2158 = vmatpush1.bf16.msra.mxu1 %v2157_v24  ;;  %2096 = vmatprep.subr.bf16.mxu0 %v2095_v25  ;;  %v308_v38 = vsub.s32 4, %v2577_v11  ;;  %v316_v39 = vsub.s32 6, %v2577_v11  ;;  %v320_v41 = vsub.s32 7, %v2577_v11 }
  0xc5   :  { %2160 = vmatprep.subr.bf16.mxu1 %v2159_v29  ;;  %v293_v21 = vrot.slane %v288_v14, %v2580_v17  ;;  %v301_v15 = vrot.slane %v288_v14, %v300_v18  ;;  %v297_v22 = vrot.slane %v288_v14, %v2584_v19  ;;  %v305_v23 = vrot.slane %v288_v14, %v304_v20 }
  0xc6   :  { %v309_v42 = vrot.slane %v288_v14, %v308_v38  ;;  %v321_v45 = vrot.slane %v288_v14, %v320_v41 }
  0xc7   :  { %2098 = vmatpush1.bf16.msra.mxu0 %v2097_v35 }
  0xc8   :  { %2162 = vmatpush1.bf16.msra.mxu1 %v2161_v36  ;;  %2100 = vmatprep.subr.bf16.mxu0 %v2099_v37 }
  0xc9   :  { %2164 = vmatprep.subr.bf16.mxu1 %v2163_v40  ;;  %v312_v40 = vsub.s32 5, %v2577_v11  ;;  %v1360_v11 = vld [vmem:[#allocation2 + $0x13b0] sm:$0xff] }
  0xcb   :  { %2102 = vmatpush1.bf16.msra.mxu0 %v2101_v43  ;;  %v317_v43 = vrot.slane %v288_v14, %v316_v39 }
  0xcc   :  { %2166 = vmatpush1.bf16.msra.mxu1 %v2165_v44  ;;  %2104 = vmatprep.subr.bf16.mxu0 %v2103_v48  ;;  %v313_v44 = vrot.slane %v288_v14, %v312_v40 }
  0xcd   :  { %2168 = vmatprep.subr.bf16.mxu1 %v2167_v52 }
  0xcf   :  { %2106 = vmatpush1.bf16.msra.mxu0 %v2105_v53 }
  0xd0   :  { %2170 = vmatpush1.bf16.msra.mxu1 %v2169_v55  ;;  %2108 = vmatprep.subr.bf16.mxu0 %v2107_v59  ;;  %v640_v59 = vld [vmem:[#allocation2 + $0x860] sm:$0xff] }
  0xd1   :  { %2172 = vmatprep.subr.bf16.mxu1 %v2171_v63  ;;  %v649_v63 = vld [vmem:[#allocation2 + $0x8a8] sm:$0xff]  ;;  %v2177_v5 = vpack.c.bf16 %v640_v59, %v632_v57  ;;  %v706_v57 = vld [vmem:[#allocation2 + $0xa70] sm:$0xff] }
  0xd2   :  { %v2179_v13 = vpack.c.bf16 %v657_v1, %v649_v63  ;;  %v721_v59 = vld [vmem:[#allocation2 + $0xae8] sm:$0xff]  ;;  %v712_v1 = vld [vmem:[#allocation2 + $0xaa0] sm:$0xff] }
  0xd3   :  { %2110 = vmatpush1.bf16.msra.mxu0 %v2109_v0 }
  0xd4   :  { %2174 = vmatpush1.bf16.msra.mxu1 %v2173_v3  ;;  %2176 = vmatprep.subr.bf16.mxu0 %v2175_v7  ;;  %v659_v3 = vld [vmem:[#allocation2 + $0x8f8] sm:$0xff]  ;;  %v648_v7 = vld [vmem:[#allocation2 + $0x8a0] sm:$0xff] }
  0xd5   :  { %2240 = vmatprep.subr.bf16.mxu1 %v2239_v9  ;;  %v650_v9 = vld [vmem:[#allocation2 + $0x8b0] sm:$0xff]  ;;  %v2243_v14 = vpack.c.bf16 %v659_v3, %v651_v2  ;;  %v720_v2 = vld [vmem:[#allocation2 + $0xae0] sm:$0xff] }
 0x129   :  { %v396_v24 = vpop.f32.mrb[0].mxu0 }
 0x12a   :  { %v397_v25 = vadd.f32 %v396_v24, %v293_v21  ;;  %v467_v26 = vpop.f32.mrb[0].mxu1  ;;  %v398_v27 = vpop.f32.mrb[1].mxu0  ;;  %v673_v21 = vld [vmem:[#allocation2 + $0x968] sm:$0xff]  ;;  %v2245_v24 = vpack.c.bf16 %v658_v10, %v650_v9  ;;  %v731_v9 = vld [vmem:[#allocation2 + $0xb38] sm:$0xff] }
 0x12b   :  { %v468_v28 = vadd.f32 %v467_v26, %v301_v15  ;;  %v399_v29 = vadd.f32 %v398_v27, %v297_v22  ;;  %v469_v30 = vpop.f32.mrb[1].mxu1  ;;  %v667_v15 = vld [vmem:[#allocation2 + $0x938] sm:$0xff]  ;;  %v672_v26 = vld [vmem:[#allocation2 + $0x960] sm:$0xff]  ;;  %v2183_v27 = vpack.c.bf16 %v673_v21, %v665_v12  ;;  %v2197_v12 = vpack.c.bf16 %v720_v2, %v712_v1  ;;  %v793_v1 = vld [vmem:[#allocation2 + $0xd28] sm:$0xff] }
 0x12c   :  { %v614_v31 = vmax.f32 %v397_v25, 0.0  ;;  %v470_v32 = vadd.f32 %v469_v30, %v305_v23  ;;  %v675_v22 = vld [vmem:[#allocation2 + $0x978] sm:$0xff]  ;;  %v2181_v23 = vpack.c.bf16 %v656_v8, %v648_v7  ;;  %v664_v25 = vld [vmem:[#allocation2 + $0x920] sm:$0xff]  ;;  %v674_v30 = vld [vmem:[#allocation2 + $0x970] sm:$0xff] }
 0x12d   :  { %v616_v33 = vmax.f32 %v468_v28, 0.0  ;;  %v615_v34 = vmax.f32 %v399_v29, 0.0  ;;  %v2247_v28 = vpack.c.bf16 %v675_v22, %v667_v15  ;;  %v666_v29 = vld [vmem:[#allocation2 + $0x930] sm:$0xff]  ;;  %v729_v7 = vld [vmem:[#allocation2 + $0xb28] sm:$0xff]  ;;  %v739_v10 = vld [vmem:[#allocation2 + $0xb78] sm:$0xff] }
 0x12e   :  { %v617_v35 = vmax.f32 %v470_v32, 0.0  ;;  %v689_v32 = vld [vmem:[#allocation2 + $0x9e8] sm:$0xff]  ;;  %v736_v21 = vld [vmem:[#allocation2 + $0xb60] sm:$0xff]  ;;  %v2263_v22 = vpack.c.bf16 %v739_v10, %v731_v9 }
 0x12f   :  { %v622_v36 = vmax.f32 %v614_v31, %v616_v33  ;;  %v681_v31 = vld [vmem:[#allocation2 + $0x9a8] sm:$0xff]  ;;  %v683_v33 = vld [vmem:[#allocation2 + $0x9b8] sm:$0xff] }
 0x130   :  { %v623_v37 = vmax.f32 %v615_v34, %v617_v35  ;;  %v691_v34 = vld [vmem:[#allocation2 + $0x9f8] sm:$0xff]  ;;  %v2185_v35 = vpack.c.bf16 %v672_v26, %v664_v25  ;;  %v737_v8 = vld [vmem:[#allocation2 + $0xb68] sm:$0xff] }
 0x131   :  { %v2199_v15 = vpack.c.bf16 %v737_v8, %v729_v7  ;;  %v745_v25 = vld [vmem:[#allocation2 + $0xba8] sm:$0xff]  ;;  %v792_v7 = vld [vmem:[#allocation2 + $0xd20] sm:$0xff] }
 0x132   :  { %v753_v26 = vld [vmem:[#allocation2 + $0xbe8] sm:$0xff]  ;;  %v800_v8 = vld [vmem:[#allocation2 + $0xd60] sm:$0xff] }
 0x133   :  { %v801_v2 = vld [vmem:[#allocation2 + $0xd68] sm:$0xff] }
 0x134   :  { %v2215_v9 = vpack.c.bf16 %v801_v2, %v793_v1  ;;  %v856_v1 = vld [vmem:[#allocation2 + $0xf20] sm:$0xff] }
 0x135   :  { %v864_v2 = vld [vmem:[#allocation2 + $0xf60] sm:$0xff] }
 0x169   :  { %v538_v46 = vpop.f32.mrb[2].mxu0 }
 0x16a   :  { %v539_v47 = vadd.f32 %v538_v46, %v309_v42  ;;  %v609_v48 = vpop.f32.mrb[2].mxu1  ;;  %v540_v49 = vpop.f32.mrb[3].mxu0  ;;  %v688_v42 = vld [vmem:[#allocation2 + $0x9e0] sm:$0xff]  ;;  %v690_v46 = vld [vmem:[#allocation2 + $0x9f0] sm:$0xff] }
 0x16b   :  { %v610_v50 = vadd.f32 %v609_v48, %v317_v43  ;;  %v541_v51 = vadd.f32 %v540_v49, %v313_v44  ;;  %v611_v52 = vpop.f32.mrb[3].mxu1  ;;  %v2187_v43 = vpack.c.bf16 %v689_v32, %v681_v31  ;;  %v2251_v44 = vpack.c.bf16 %v691_v34, %v683_v33  ;;  %v705_v48 = vld [vmem:[#allocation2 + $0xa68] sm:$0xff]  ;;  %v699_v49 = vld [vmem:[#allocation2 + $0xa38] sm:$0xff]  ;;  %v744_v31 = vld [vmem:[#allocation2 + $0xba0] sm:$0xff] }
 0x16c   :  { %v618_v53 = vmax.f32 %v539_v47, 0.0  ;;  %v612_v16 = vadd.f32 %v611_v52, %v321_v45  ;;  %v682_v45 = vld [vmem:[#allocation2 + $0x9b0] sm:$0xff]  ;;  %v697_v47 = vld [vmem:[#allocation2 + $0xa28] sm:$0xff]  ;;  %v752_v32 = vld [vmem:[#allocation2 + $0xbe0] sm:$0xff]  ;;  %v2203_v33 = vpack.c.bf16 %v753_v26, %v745_v25 }
 0x16d   :  { %v620_v54 = vmax.f32 %v610_v50, 0.0  ;;  %v619_v55 = vmax.f32 %v541_v51, 0.0  ;;  %v707_v50 = vld [vmem:[#allocation2 + $0xa78] sm:$0xff]  ;;  %v2253_v52 = vpack.c.bf16 %v690_v46, %v682_v45  ;;  %v2205_v45 = vpack.c.bf16 %v752_v32, %v744_v31  ;;  %v808_v25 = vld [vmem:[#allocation2 + $0xda0] sm:$0xff]  ;;  %v825_v31 = vld [vmem:[#allocation2 + $0xe28] sm:$0xff] }
 0x16e   :  { %v621_v56 = vmax.f32 %v612_v16, 0.0  ;;  %v704_v16 = vld [vmem:[#allocation2 + $0xa60] sm:$0xff]  ;;  %v833_v32 = vld [vmem:[#allocation2 + $0xe68] sm:$0xff] }
 0x16f   :  { %v624_v58 = vmax.f32 %v618_v53, %v620_v54  ;;  %v696_v53 = vld [vmem:[#allocation2 + $0xa20] sm:$0xff]  ;;  %v2191_v54 = vpack.c.bf16 %v705_v48, %v697_v47 }
 0x170   :  { %v625_v62 = vmax.f32 %v619_v55, %v621_v56  ;;  %v2255_v55 = vpack.c.bf16 %v707_v50, %v699_v49  ;;  %v698_v56 = vld [vmem:[#allocation2 + $0xa30] sm:$0xff]  ;;  %v760_v47 = vld [vmem:[#allocation2 + $0xc20] sm:$0xff] }
 0x171   :  { %v2605_v0 = vmax.f32 %v622_v36, %v624_v58  ;;  %v2249_v36 = vpack.c.bf16 %v674_v30, %v666_v29  ;;  %v713_v58 = vld [vmem:[#allocation2 + $0xaa8] sm:$0xff]  ;;  %v2257_v63 = vpack.c.bf16 %v706_v57, %v698_v56  ;;  %v768_v48 = vld [vmem:[#allocation2 + $0xc60] sm:$0xff] }
 0x172   :  { %v627_v4 = vmax.f32 %v623_v37, %v625_v62  ;;  %v680_v37 = vld [vmem:[#allocation2 + $0x9a0] sm:$0xff]  ;;  %v2193_v62 = vpack.c.bf16 %v704_v16, %v696_v53  ;;  %v2195_v3 = vpack.c.bf16 %v721_v59, %v713_v58  ;;  %v777_v53 = vld [vmem:[#allocation2 + $0xca8] sm:$0xff]  ;;  %v2209_v56 = vpack.c.bf16 %v768_v48, %v760_v47 }
 0x173   :  { %v2189_v51 = vpack.c.bf16 %v688_v42, %v680_v37  ;;  %v761_v37 = vld [vmem:[#allocation2 + $0xc28] sm:$0xff]  ;;  %v776_v58 = vld [vmem:[#allocation2 + $0xca0] sm:$0xff] }
 0x174   :  { %993 = vmatprep.mubr.f32.mxu0 %v627_v4  ;;  %1064 = vmatprep.mubr.f32.mxu1 %v627_v4  ;;  %v769_v42 = vld [vmem:[#allocation2 + $0xc68] sm:$0xff]  ;;  %v784_v59 = vld [vmem:[#allocation2 + $0xce0] sm:$0xff] }
 0x175   :  { %994 = vmatmul.mubr.f32.vlgmr.msra.gmra.mrb[4].mxu0 %v2605_v0  ;;  %1065 = vmatmul.mubr.f32.vlgmr.msra.gmra.mrb[4].mxu1 %v2605_v0  ;;  %v2207_v49 = vpack.c.bf16 %v769_v42, %v761_v37  ;;  %v785_v16 = vld [vmem:[#allocation2 + $0xce8] sm:$0xff]  ;;  %v816_v26 = vld [vmem:[#allocation2 + $0xde0] sm:$0xff] }
 0x176   :  { %2178 = vmatpush1.bf16.msra.mxu0 %v2177_v5  ;;  %2242 = vmatpush1.bf16.msra.mxu1 %v2241_v6  ;;  %v714_v5 = vld [vmem:[#allocation2 + $0xab0] sm:$0xff]  ;;  %v824_v37 = vld [vmem:[#allocation2 + $0xe20] sm:$0xff]  ;;  %v841_v47 = vld [vmem:[#allocation2 + $0xea8] sm:$0xff] }
 0x177   :  { %1135 = vmatprep.mubr.f32.mxu0 %v627_v4  ;;  %1206 = vmatprep.mubr.f32.mxu1 %v627_v4  ;;  %v2259_v4 = vpack.c.bf16 %v723_v61, %v715_v60  ;;  %v722_v6 = vld [vmem:[#allocation2 + $0xaf0] sm:$0xff]  ;;  %v2211_v60 = vpack.c.bf16 %v785_v16, %v777_v53  ;;  %v832_v42 = vld [vmem:[#allocation2 + $0xe60] sm:$0xff]  ;;  %v849_v48 = vld [vmem:[#allocation2 + $0xee8] sm:$0xff] }
 0x178   :  { %2180 = vmatprep.subr.bf16.mxu0 %v2179_v13  ;;  %2244 = vmatprep.subr.bf16.mxu1 %v2243_v14  ;;  %v2261_v13 = vpack.c.bf16 %v722_v6, %v714_v5  ;;  %v728_v14 = vld [vmem:[#allocation2 + $0xb20] sm:$0xff]  ;;  %v2213_v5 = vpack.c.bf16 %v784_v59, %v776_v58  ;;  %v857_v58 = vld [vmem:[#allocation2 + $0xf28] sm:$0xff] }
 0x179   :  { %v2201_v29 = vpack.c.bf16 %v736_v21, %v728_v14  ;;  %v809_v14 = vld [vmem:[#allocation2 + $0xda8] sm:$0xff]  ;;  %v840_v53 = vld [vmem:[#allocation2 + $0xea0] sm:$0xff] }
 0x17a   :  { %2182 = vmatpush1.bf16.msra.mxu0 %v2181_v23  ;;  %2246 = vmatpush1.bf16.msra.mxu1 %v2245_v24  ;;  %v730_v23 = vld [vmem:[#allocation2 + $0xb30] sm:$0xff]  ;;  %v817_v21 = vld [vmem:[#allocation2 + $0xde8] sm:$0xff]  ;;  %v848_v16 = vld [vmem:[#allocation2 + $0xee0] sm:$0xff] }
 0x17b   :  { %2184 = vmatprep.subr.bf16.mxu0 %v2183_v27  ;;  %2248 = vmatprep.subr.bf16.mxu1 %v2247_v28  ;;  %v738_v24 = vld [vmem:[#allocation2 + $0xb70] sm:$0xff]  ;;  %v747_v27 = vld [vmem:[#allocation2 + $0xbb8] sm:$0xff]  ;;  %v865_v59 = vld [vmem:[#allocation2 + $0xf68] sm:$0xff] }
 0x17c   :  { %v755_v28 = vld [vmem:[#allocation2 + $0xbf8] sm:$0xff]  ;;  %v2265_v30 = vpack.c.bf16 %v738_v24, %v730_v23  ;;  %v2217_v23 = vpack.c.bf16 %v800_v8, %v792_v7  ;;  %v873_v7 = vld [vmem:[#allocation2 + $0xfa8] sm:$0xff] }
 0x17d   :  { %v2267_v34 = vpack.c.bf16 %v755_v28, %v747_v27  ;;  %v2219_v27 = vpack.c.bf16 %v817_v21, %v809_v14  ;;  %v881_v8 = vld [vmem:[#allocation2 + $0xfe8] sm:$0xff]  ;;  %v872_v14 = vld [vmem:[#allocation2 + $0xfa0] sm:$0xff] }
 0x17e   :  { %2186 = vmatpush1.bf16.msra.mxu0 %v2185_v35  ;;  %2250 = vmatpush1.bf16.msra.mxu1 %v2249_v36  ;;  %v746_v35 = vld [vmem:[#allocation2 + $0xbb0] sm:$0xff]  ;;  %v2235_v21 = vpack.c.bf16 %v881_v8, %v873_v7  ;;  %v1257_v8 = vld [vmem:[#allocation2 + $0x1780] sm:$0xff] }
 0x17f   :  { %2188 = vmatprep.subr.bf16.mxu0 %v2187_v43  ;;  %2252 = vmatprep.subr.bf16.mxu1 %v2251_v44  ;;  %v754_v36 = vld [vmem:[#allocation2 + $0xbf0] sm:$0xff]  ;;  %v763_v43 = vld [vmem:[#allocation2 + $0xc38] sm:$0xff] }
 0x180   :  { %v771_v44 = vld [vmem:[#allocation2 + $0xc78] sm:$0xff]  ;;  %v2269_v46 = vpack.c.bf16 %v754_v36, %v746_v35  ;;  %v2221_v35 = vpack.c.bf16 %v816_v26, %v808_v25 }
 0x181   :  { %v2271_v50 = vpack.c.bf16 %v771_v44, %v763_v43  ;;  %v2223_v43 = vpack.c.bf16 %v833_v32, %v825_v31  ;;  %v1228_v31 = vld [vmem:[#allocation2 + $0x1040] sm:$0xff] }
 0x182   :  { %2190 = vmatpush1.bf16.msra.mxu0 %v2189_v51  ;;  %2254 = vmatpush1.bf16.msra.mxu1 %v2253_v52  ;;  %v762_v51 = vld [vmem:[#allocation2 + $0xc30] sm:$0xff]  ;;  %v1245_v32 = vld [vmem:[#allocation2 + $0x1480] sm:$0xff] }
 0x183   :  { %2192 = vmatprep.subr.bf16.mxu0 %v2191_v54  ;;  %2256 = vmatprep.subr.bf16.mxu1 %v2255_v55  ;;  %v770_v52 = vld [vmem:[#allocation2 + $0xc70] sm:$0xff]  ;;  %v779_v54 = vld [vmem:[#allocation2 + $0xcb8] sm:$0xff] }
 0x184   :  { %v787_v55 = vld [vmem:[#allocation2 + $0xcf8] sm:$0xff]  ;;  %v2273_v57 = vpack.c.bf16 %v770_v52, %v762_v51  ;;  %v2225_v51 = vpack.c.bf16 %v832_v42, %v824_v37  ;;  %v1230_v37 = vld [vmem:[#allocation2 + $0x10c0] sm:$0xff] }
 0x185   :  { %v2275_v61 = vpack.c.bf16 %v787_v55, %v779_v54  ;;  %v2227_v54 = vpack.c.bf16 %v849_v48, %v841_v47  ;;  %v1247_v42 = vld [vmem:[#allocation2 + $0x1500] sm:$0xff] }
 0x186   :  { %2194 = vmatpush1.bf16.msra.mxu0 %v2193_v62  ;;  %2258 = vmatpush1.bf16.msra.mxu1 %v2257_v63  ;;  %v778_v62 = vld [vmem:[#allocation2 + $0xcb0] sm:$0xff]  ;;  %v1249_v47 = vld [vmem:[#allocation2 + $0x1580] sm:$0xff] }
 0x187   :  { %2196 = vmatprep.subr.bf16.mxu0 %v2195_v3  ;;  %2260 = vmatprep.subr.bf16.mxu1 %v2259_v4  ;;  %v786_v63 = vld [vmem:[#allocation2 + $0xcf0] sm:$0xff]  ;;  %v795_v3 = vld [vmem:[#allocation2 + $0xd38] sm:$0xff]  ;;  %v1250_v48 = vld [vmem:[#allocation2 + $0x15c0] sm:$0xff] }
 0x188   :  { %v803_v4 = vld [vmem:[#allocation2 + $0xd78] sm:$0xff]  ;;  %v2277_v6 = vpack.c.bf16 %v786_v63, %v778_v62  ;;  %v2229_v62 = vpack.c.bf16 %v848_v16, %v840_v53  ;;  %v1251_v53 = vld [vmem:[#allocation2 + $0x1600] sm:$0xff] }
 0x189   :  { %v2279_v10 = vpack.c.bf16 %v803_v4, %v795_v3  ;;  %v2231_v3 = vpack.c.bf16 %v865_v59, %v857_v58  ;;  %v1252_v16 = vld [vmem:[#allocation2 + $0x1640] sm:$0xff] }
 0x18a   :  { %2198 = vmatpush1.bf16.msra.mxu0 %v2197_v12  ;;  %2262 = vmatpush1.bf16.msra.mxu1 %v2261_v13  ;;  %v794_v12 = vld [vmem:[#allocation2 + $0xd30] sm:$0xff]  ;;  %v1253_v58 = vld [vmem:[#allocation2 + $0x1680] sm:$0xff] }
 0x18b   :  { %2200 = vmatprep.subr.bf16.mxu0 %v2199_v15  ;;  %2264 = vmatprep.subr.bf16.mxu1 %v2263_v22  ;;  %v802_v13 = vld [vmem:[#allocation2 + $0xd70] sm:$0xff]  ;;  %v811_v15 = vld [vmem:[#allocation2 + $0xdb8] sm:$0xff]  ;;  %v1254_v59 = vld [vmem:[#allocation2 + $0x16c0] sm:$0xff] }
 0x18c   :  { %v819_v22 = vld [vmem:[#allocation2 + $0xdf8] sm:$0xff]  ;;  %v2281_v24 = vpack.c.bf16 %v802_v13, %v794_v12  ;;  %v2233_v12 = vpack.c.bf16 %v864_v2, %v856_v1  ;;  %v1255_v2 = vld [vmem:[#allocation2 + $0x1700] sm:$0xff] }
 0x18d   :  { %v2283_v28 = vpack.c.bf16 %v819_v22, %v811_v15  ;;  %v880_v22 = vld [vmem:[#allocation2 + $0xfe0] sm:$0xff] }
 0x18e   :  { %2202 = vmatpush1.bf16.msra.mxu0 %v2201_v29  ;;  %2266 = vmatpush1.bf16.msra.mxu1 %v2265_v30  ;;  %v810_v29 = vld [vmem:[#allocation2 + $0xdb0] sm:$0xff]  ;;  %v2237_v25 = vpack.c.bf16 %v880_v22, %v872_v14  ;;  %v1331_v22 = vld [vmem:[#allocation2 + $0x1028] sm:$0xff] }
 0x18f   :  { %2204 = vmatprep.subr.bf16.mxu0 %v2203_v33  ;;  %2268 = vmatprep.subr.bf16.mxu1 %v2267_v34  ;;  %v818_v30 = vld [vmem:[#allocation2 + $0xdf0] sm:$0xff]  ;;  %v827_v33 = vld [vmem:[#allocation2 + $0xe38] sm:$0xff] }
 0x190   :  { %v835_v34 = vld [vmem:[#allocation2 + $0xe78] sm:$0xff]  ;;  %v2285_v36 = vpack.c.bf16 %v818_v30, %v810_v29  ;;  %v1227_v29 = vld [vmem:[#allocation2 + $0x1000] sm:$0xff] }
 0x191   :  { %v2287_v44 = vpack.c.bf16 %v835_v34, %v827_v33  ;;  %v1246_v33 = vld [vmem:[#allocation2 + $0x14c0] sm:$0xff]  ;;  %v2305_v34 = vpack.c.bf16 %v1228_v31, %v1227_v29  ;;  %v1335_v29 = vld [vmem:[#allocation2 + $0x10a8] sm:$0xff]  ;;  %v1340_v31 = vld [vmem:[#allocation2 + $0x1130] sm:$0xff] }
 0x192   :  { %2206 = vmatpush1.bf16.msra.mxu0 %v2205_v45  ;;  %2270 = vmatpush1.bf16.msra.mxu1 %v2269_v46  ;;  %v826_v45 = vld [vmem:[#allocation2 + $0xe30] sm:$0xff] }
 0x193   :  { %2208 = vmatprep.subr.bf16.mxu0 %v2207_v49  ;;  %2272 = vmatprep.subr.bf16.mxu1 %v2271_v50  ;;  %v834_v46 = vld [vmem:[#allocation2 + $0xe70] sm:$0xff]  ;;  %v843_v49 = vld [vmem:[#allocation2 + $0xeb8] sm:$0xff] }
 0x194   :  { %v851_v50 = vld [vmem:[#allocation2 + $0xef8] sm:$0xff]  ;;  %v2289_v52 = vpack.c.bf16 %v834_v46, %v826_v45  ;;  %v1231_v46 = vld [vmem:[#allocation2 + $0x1100] sm:$0xff] }
 0x195   :  { %v2291_v55 = vpack.c.bf16 %v851_v50, %v843_v49  ;;  %v2315_v50 = vpack.c.bf16 %v1250_v48, %v1249_v47  ;;  %v1350_v47 = vld [vmem:[#allocation2 + $0x1270] sm:$0xff] }
 0x196   :  { %2210 = vmatpush1.bf16.msra.mxu0 %v2209_v56  ;;  %2274 = vmatpush1.bf16.msra.mxu1 %v2273_v57  ;;  %v842_v56 = vld [vmem:[#allocation2 + $0xeb0] sm:$0xff] }
 0x197   :  { %2212 = vmatprep.subr.bf16.mxu0 %v2211_v60  ;;  %2276 = vmatprep.subr.bf16.mxu1 %v2275_v61  ;;  %v850_v57 = vld [vmem:[#allocation2 + $0xef0] sm:$0xff]  ;;  %v859_v60 = vld [vmem:[#allocation2 + $0xf38] sm:$0xff] }
 0x198   :  { %v867_v61 = vld [vmem:[#allocation2 + $0xf78] sm:$0xff]  ;;  %v2293_v63 = vpack.c.bf16 %v850_v57, %v842_v56  ;;  %v1235_v56 = vld [vmem:[#allocation2 + $0x1200] sm:$0xff] }
 0x199   :  { %v2295_v4 = vpack.c.bf16 %v867_v61, %v859_v60  ;;  %v1236_v57 = vld [vmem:[#allocation2 + $0x1240] sm:$0xff]  ;;  %v2323_v61 = vpack.c.bf16 %v1254_v59, %v1253_v58  ;;  %v1358_v58 = vld [vmem:[#allocation2 + $0x1370] sm:$0xff] }
 0x19a   :  { %2214 = vmatpush1.bf16.msra.mxu0 %v2213_v5  ;;  %2278 = vmatpush1.bf16.msra.mxu1 %v2277_v6  ;;  %v858_v5 = vld [vmem:[#allocation2 + $0xf30] sm:$0xff]  ;;  %v2321_v60 = vpack.c.bf16 %v1236_v57, %v1235_v56  ;;  %v1353_v56 = vld [vmem:[#allocation2 + $0x12e8] sm:$0xff] }
 0x19b   :  { %2216 = vmatprep.subr.bf16.mxu0 %v2215_v9  ;;  %2280 = vmatprep.subr.bf16.mxu1 %v2279_v10  ;;  %v866_v6 = vld [vmem:[#allocation2 + $0xf70] sm:$0xff]  ;;  %v875_v9 = vld [vmem:[#allocation2 + $0xfb8] sm:$0xff] }
 0x19c   :  { %v883_v10 = vld [vmem:[#allocation2 + $0xff8] sm:$0xff]  ;;  %v2297_v13 = vpack.c.bf16 %v866_v6, %v858_v5  ;;  %v1239_v5 = vld [vmem:[#allocation2 + $0x1300] sm:$0xff]  ;;  %v1356_v57 = vld [vmem:[#allocation2 + $0x1330] sm:$0xff] }
 0x19d   :  { %v2299_v15 = vpack.c.bf16 %v883_v10, %v875_v9  ;;  %v1240_v6 = vld [vmem:[#allocation2 + $0x1340] sm:$0xff] }
 0x19e   :  { %2218 = vmatpush1.bf16.msra.mxu0 %v2217_v23  ;;  %2282 = vmatpush1.bf16.msra.mxu1 %v2281_v24  ;;  %v874_v23 = vld [vmem:[#allocation2 + $0xfb0] sm:$0xff]  ;;  %v2329_v7 = vpack.c.bf16 %v1240_v6, %v1239_v5  ;;  %v1258_v9 = vld [vmem:[#allocation2 + $0x17c0] sm:$0xff] }
 0x19f   :  { %2220 = vmatprep.subr.bf16.mxu0 %v2219_v27  ;;  %2284 = vmatprep.subr.bf16.mxu1 %v2283_v28  ;;  %v882_v24 = vld [vmem:[#allocation2 + $0xff0] sm:$0xff]  ;;  %v1243_v27 = vld [vmem:[#allocation2 + $0x1400] sm:$0xff]  ;;  %v2331_v10 = vpack.c.bf16 %v1258_v9, %v1257_v8 }
 0x1a0   :  { %v2301_v26 = vpack.c.bf16 %v882_v24, %v874_v23  ;;  %v1244_v28 = vld [vmem:[#allocation2 + $0x1440] sm:$0xff]  ;;  %v1333_v24 = vld [vmem:[#allocation2 + $0x1068] sm:$0xff] }
 0x1a1   :  { %v2303_v30 = vpack.c.bf16 %v1244_v28, %v1243_v27  ;;  %v2337_v27 = vpack.c.bf16 %v1333_v24, %v1331_v22 }
 0x1a2   :  { %2222 = vmatpush1.bf16.msra.mxu0 %v2221_v35  ;;  %2286 = vmatpush1.bf16.msra.mxu1 %v2285_v36  ;;  %v2307_v35 = vpack.c.bf16 %v1246_v33, %v1245_v32  ;;  %v1229_v36 = vld [vmem:[#allocation2 + $0x1080] sm:$0xff]  ;;  %v1342_v32 = vld [vmem:[#allocation2 + $0x1170] sm:$0xff] }
 0x1a3   :  { %2224 = vmatprep.subr.bf16.mxu0 %v2223_v43  ;;  %2288 = vmatprep.subr.bf16.mxu1 %v2287_v44  ;;  %v1248_v43 = vld [vmem:[#allocation2 + $0x1540] sm:$0xff]  ;;  %v2309_v44 = vpack.c.bf16 %v1230_v37, %v1229_v36  ;;  %v1341_v36 = vld [vmem:[#allocation2 + $0x1168] sm:$0xff]  ;;  %v1344_v37 = vld [vmem:[#allocation2 + $0x11b0] sm:$0xff] }
 0x1a4   :  { %v2311_v45 = vpack.c.bf16 %v1248_v43, %v1247_v42  ;;  %v1346_v42 = vld [vmem:[#allocation2 + $0x11f0] sm:$0xff] }
 0x1a6   :  { %2226 = vmatpush1.bf16.msra.mxu0 %v2225_v51  ;;  %2290 = vmatpush1.bf16.msra.mxu1 %v2289_v52  ;;  %v1233_v51 = vld [vmem:[#allocation2 + $0x1180] sm:$0xff] }
 0x1a7   :  { %2228 = vmatprep.subr.bf16.mxu0 %v2227_v54  ;;  %2292 = vmatprep.subr.bf16.mxu1 %v2291_v55  ;;  %v1234_v52 = vld [vmem:[#allocation2 + $0x11c0] sm:$0xff]  ;;  %v2319_v55 = vpack.c.bf16 %v1252_v16, %v1251_v53  ;;  %v1354_v53 = vld [vmem:[#allocation2 + $0x12f0] sm:$0xff] }
 0x1a8   :  { %v2317_v54 = vpack.c.bf16 %v1234_v52, %v1233_v51  ;;  %v1349_v51 = vld [vmem:[#allocation2 + $0x1268] sm:$0xff]  ;;  %v1352_v52 = vld [vmem:[#allocation2 + $0x12b0] sm:$0xff] }
 0x1aa   :  { %2230 = vmatpush1.bf16.msra.mxu0 %v2229_v62  ;;  %2294 = vmatpush1.bf16.msra.mxu1 %v2293_v63  ;;  %v1237_v62 = vld [vmem:[#allocation2 + $0x1280] sm:$0xff] }
 0x1ab   :  { %2232 = vmatprep.subr.bf16.mxu0 %v2231_v3  ;;  %2296 = vmatprep.subr.bf16.mxu1 %v2295_v4  ;;  %v1238_v63 = vld [vmem:[#allocation2 + $0x12c0] sm:$0xff] }
 0x1ac   :  { %v2325_v1 = vpack.c.bf16 %v1238_v63, %v1237_v62  ;;  %v1256_v3 = vld [vmem:[#allocation2 + $0x1740] sm:$0xff]  ;;  %v1357_v62 = vld [vmem:[#allocation2 + $0x1368] sm:$0xff] }
 0x1ad   :  { %v2327_v4 = vpack.c.bf16 %v1256_v3, %v1255_v2  ;;  %v886_v2 = vld [vmem:[#allocation2 + $0x1840] ss:$8 sm:$0xf0] }
 0x1ae   :  { %2234 = vmatpush1.bf16.msra.mxu0 %v2233_v12  ;;  %2298 = vmatpush1.bf16.msra.mxu1 %v2297_v13  ;;  %v1241_v12 = vld [vmem:[#allocation2 + $0x1380] sm:$0xff] }
 0x1af   :  { %2236 = vmatprep.subr.bf16.mxu0 %v2235_v21  ;;  %2300 = vmatprep.subr.bf16.mxu1 %v2299_v15  ;;  %v1242_v13 = vld [vmem:[#allocation2 + $0x13c0] sm:$0xff]  ;;  %v1332_v21 = vld [vmem:[#allocation2 + $0x1030] sm:$0xff] }
 0x1b0   :  { %v2333_v14 = vpack.c.bf16 %v1242_v13, %v1241_v12  ;;  %v1334_v15 = vld [vmem:[#allocation2 + $0x1070] sm:$0xff] }
 0x1b1   :  { %v2335_v23 = vpack.c.bf16 %v1334_v15, %v1332_v21 }
 0x1b2   :  { %2238 = vmatpush1.bf16.msra.mxu0 %v2237_v25  ;;  %2302 = vmatpush1.bf16.msra.mxu1 %v2301_v26  ;;  %v1336_v25 = vld [vmem:[#allocation2 + $0x10b0] sm:$0xff] }
 0x1b3   :  { %2304 = vmatprep.subr.bf16.mxu0 %v2303_v30  ;;  %v1338_v26 = vld [vmem:[#allocation2 + $0x10f0] sm:$0xff]  ;;  %v1337_v30 = vld [vmem:[#allocation2 + $0x10e8] sm:$0xff]  ;;  %2336 = vmatprep.subr.bf16.mxu1 %v2335_v23 }
 0x1b4   :  { %v2339_v28 = vpack.c.bf16 %v1338_v26, %v1336_v25  ;;  %v2341_v33 = vpack.c.bf16 %v1337_v30, %v1335_v29 }
 0x1b5   :  { %1136 = vmatmul.mubr.f32.vlgmr.msra.gmra.mrb[6].mxu0 %v2605_v0  ;;  %1207 = vmatmul.mubr.f32.vlgmr.msra.gmra.mrb[6].mxu1 %v2605_v0  ;;  %v1232_v0 = vld [vmem:[#allocation2 + $0x1140] sm:$0xff] }
 0x1b6   :  { %2306 = vmatpush3.bf16.msra.mxu0 %v2305_v34  ;;  %v2313_v49 = vpack.c.bf16 %v1232_v0, %v1231_v46  ;;  %2338 = vmatpush1.bf16.msra.mxu1 %v2337_v27  ;;  %v2343_v34 = vpack.c.bf16 %v1342_v32, %v1340_v31  ;;  %v1345_v46 = vld [vmem:[#allocation2 + $0x11e8] sm:$0xff]  ;;  %v1348_v0 = vld [vmem:[#allocation2 + $0x1230] sm:$0xff] }
 0x1b7   :  { %2308 = vmatprep.subr.bf16.mxu0 %v2307_v35  ;;  %2340 = vmatprep.subr.bf16.mxu1 %v2339_v28  ;;  %v1339_v35 = vld [vmem:[#allocation2 + $0x1128] sm:$0xff] }
 0x1b8   :  { %v2345_v43 = vpack.c.bf16 %v1341_v36, %v1339_v35 }
 0x1ba   :  { %2310 = vmatpush3.bf16.msra.mxu0 %v2309_v44  ;;  %2342 = vmatpush1.bf16.msra.mxu1 %v2341_v33  ;;  %v2347_v44 = vpack.c.bf16 %v1346_v42, %v1344_v37 }
 0x1bb   :  { %2312 = vmatprep.subr.bf16.mxu0 %v2311_v45  ;;  %2344 = vmatprep.subr.bf16.mxu1 %v2343_v34  ;;  %v1343_v45 = vld [vmem:[#allocation2 + $0x11a8] sm:$0xff] }
 0x1bc   :  { %v2349_v48 = vpack.c.bf16 %v1345_v46, %v1343_v45 }
 0x1be   :  { %2314 = vmatpush3.bf16.msra.mxu0 %v2313_v49  ;;  %2346 = vmatpush1.bf16.msra.mxu1 %v2345_v43  ;;  %v2351_v49 = vpack.c.bf16 %v1350_v47, %v1348_v0  ;;  %v1359_v47 = vld [vmem:[#allocation2 + $0x13a8] sm:$0xff] }
 0x1bf   :  { %2316 = vmatprep.subr.bf16.mxu0 %v2315_v50  ;;  %2348 = vmatprep.subr.bf16.mxu1 %v2347_v44  ;;  %v1347_v50 = vld [vmem:[#allocation2 + $0x1228] sm:$0xff] }
 0x1c0   :  { %v2353_v16 = vpack.c.bf16 %v1349_v51, %v1347_v50  ;;  %v2526_v50 = vmov 0.0   ;;  %v1448_v51 = vld [vmem:[#allocation2 + $0x1010] sm:$0xff] }
 0x1c1   :  { %1440 = vmatprep.mubr.f32.mxu1 %v2526_v50 }
 0x1c2   :  { %2318 = vmatpush3.bf16.msra.mxu0 %v2317_v54  ;;  %2350 = vmatpush1.bf16.msra.mxu1 %v2349_v48  ;;  %v2355_v54 = vpack.c.bf16 %v1354_v53, %v1352_v52  ;;  %v1361_v48 = vld [vmem:[#allocation2 + $0x13e8] sm:$0xff]  ;;  %v1450_v52 = vld [vmem:[#allocation2 + $0x1050] sm:$0xff] }
 0x1c3   :  { %2320 = vmatprep.subr.bf16.mxu0 %v2319_v55  ;;  %2352 = vmatprep.subr.bf16.mxu1 %v2351_v49  ;;  %v1351_v55 = vld [vmem:[#allocation2 + $0x12a8] sm:$0xff]  ;;  %v2365_v49 = vpack.c.bf16 %v1361_v48, %v1359_v47  ;;  %v1488_v48 = vld [vmem:[#allocation2 + $0x1510] sm:$0xff] }
 0x1c4   :  { %v2357_v59 = vpack.c.bf16 %v1353_v56, %v1351_v55  ;;  %v1447_v53 = vld [vmem:[#allocation2 + $0x1008] sm:$0xff]  ;;  %v1452_v55 = vld [vmem:[#allocation2 + $0x1090] sm:$0xff] }
 0x1c5   :  { %v1454_v56 = vld [vmem:[#allocation2 + $0x10d0] sm:$0xff]  ;;  %v1485_v47 = vld [vmem:[#allocation2 + $0x14c8] sm:$0xff] }
 0x1c6   :  { %2322 = vmatpush3.bf16.msra.mxu0 %v2321_v60  ;;  %2354 = vmatpush1.bf16.msra.mxu1 %v2353_v16  ;;  %v2359_v60 = vpack.c.bf16 %v1358_v58, %v1356_v57  ;;  %v2367_v16 = vpack.c.bf16 %v1450_v52, %v1448_v51  ;;  %v2371_v58 = vpack.c.bf16 %v1454_v56, %v1452_v55  ;;  %v1487_v52 = vld [vmem:[#allocation2 + $0x1508] sm:$0xff] }
 0x1c7   :  { %2324 = vmatprep.subr.bf16.mxu0 %v2323_v61  ;;  %2356 = vmatprep.subr.bf16.mxu1 %v2355_v54  ;;  %v1355_v61 = vld [vmem:[#allocation2 + $0x1328] sm:$0xff] }
 0x1c8   :  { %v2361_v63 = vpack.c.bf16 %v1357_v62, %v1355_v61  ;;  %v1449_v54 = vld [vmem:[#allocation2 + $0x1048] sm:$0xff]  ;;  %v1456_v61 = vld [vmem:[#allocation2 + $0x1110] sm:$0xff] }
 0x1c9   :  { %v2369_v57 = vpack.c.bf16 %v1449_v54, %v1447_v53  ;;  %v1458_v62 = vld [vmem:[#allocation2 + $0x1150] sm:$0xff]  ;;  %v1489_v53 = vld [vmem:[#allocation2 + $0x1548] sm:$0xff] }
 0x1ca   :  { %2326 = vmatpush3.bf16.msra.mxu0 %v2325_v1  ;;  %2358 = vmatpush1.bf16.msra.mxu1 %v2357_v59  ;;  %v885_v1 = vld [vmem:[#allocation2 + $0x1840] ss:$8 sm:$0xf]  ;;  %v2409_v55 = vpack.c.bf16 %v1489_v53, %v1487_v52 }
 0x1cb   :  { %2328 = vmatprep.subr.bf16.mxu0 %v2327_v4  ;;  %2360 = vmatprep.subr.bf16.mxu1 %v2359_v60  ;;  %v887_v3 = vor.u32 %v886_v2, %v885_v1  ;;  %v1451_v59 = vld [vmem:[#allocation2 + $0x1088] sm:$0xff]  ;;  %v2375_v1 = vpack.c.bf16 %v1458_v62, %v1456_v61  ;;  %v1494_v54 = vld [vmem:[#allocation2 + $0x15d0] sm:$0xff]  ;;  %v1616_v52 = vld [vmem:[#allocation2 + $0x1260] sm:$0xff] }
 0x1cc   :  { %v1453_v60 = vld [vmem:[#allocation2 + $0x10c8] sm:$0xff] }
 0x1cd   :  { %v892_v4 = vrot.slane %v887_v3, %v2580_v17  ;;  %v900_v5 = vrot.slane %v887_v3, %v300_v18  ;;  %v896_v6 = vrot.slane %v887_v3, %v2584_v19  ;;  %v908_v18 = vrot.slane %v887_v3, %v308_v38  ;;  %v1455_v2 = vld [vmem:[#allocation2 + $0x1108] sm:$0xff] }
 0x1ce   :  { %2330 = vmatpush3.bf16.msra.mxu0 %v2329_v7  ;;  %2362 = vmatpush1.bf16.msra.mxu1 %v2361_v63  ;;  %v904_v7 = vrot.slane %v887_v3, %v304_v20  ;;  %v916_v20 = vrot.slane %v887_v3, %v316_v39  ;;  %v912_v28 = vrot.slane %v887_v3, %v312_v40  ;;  %v1362_v40 = vld [vmem:[#allocation2 + $0x13f0] sm:$0xff] }
 0x1cf   :  { %2332 = vmatprep.subr.bf16.mxu0 %v2331_v10  ;;  %v920_v29 = vrot.slane %v887_v3, %v320_v41  ;;  %v2363_v41 = vpack.c.bf16 %v1362_v40, %v1360_v11  ;;  %v2373_v63 = vpack.c.bf16 %v1453_v60, %v1451_v59  ;;  %v1457_v3 = vld [vmem:[#allocation2 + $0x1148] sm:$0xff]  ;;  %v1496_v59 = vld [vmem:[#allocation2 + $0x1610] sm:$0xff] }
 0x1d0   :  { %v1498_v60 = vld [vmem:[#allocation2 + $0x1650] sm:$0xff] }
 0x1d1   :  { %2364 = vmatprep.subr.bf16.mxu1 %v2363_v41  ;;  %v1483_v41 = vld [vmem:[#allocation2 + $0x1488] sm:$0xff]  ;;  %v2415_v62 = vpack.c.bf16 %v1498_v60, %v1496_v59  ;;  %v1617_v60 = vld [vmem:[#allocation2 + $0x1298] sm:$0xff] }
 0x1d2   :  { %2334 = vmatpush3.bf16.msra.mxu0 %v2333_v14  ;;  %2366 = vmatpush1.bf16.msra.mxu1 %v2365_v49  ;;  %v1490_v49 = vld [vmem:[#allocation2 + $0x1550] sm:$0xff]  ;;  %v2405_v50 = vpack.c.bf16 %v1485_v47, %v1483_v41  ;;  %v1612_v41 = vld [vmem:[#allocation2 + $0x11e0] sm:$0xff] }
 0x1d3   :  { %2368 = vmatprep.subr.bf16.mxu0 %v2367_v16  ;;  %v2407_v51 = vpack.c.bf16 %v1490_v49, %v1488_v48  ;;  %v1492_v16 = vld [vmem:[#allocation2 + $0x1590] sm:$0xff]  ;;  %v1609_v49 = vld [vmem:[#allocation2 + $0x1198] sm:$0xff] }
 0x1d4   :  { %v2411_v56 = vpack.c.bf16 %v1494_v54, %v1492_v16  ;;  %v1613_v54 = vld [vmem:[#allocation2 + $0x1218] sm:$0xff] }
 0x248   :  { %v995_v8 = vpop.f32.mrb[4].mxu0  ;;  %v1066_v9 = vpop.f32.mrb[4].mxu1 }
 0x249   :  { %v996_v10 = vadd.f32 %v995_v8, %v892_v4  ;;  %v1067_v12 = vadd.f32 %v1066_v9, %v900_v5  ;;  %v997_v13 = vpop.f32.mrb[5].mxu0  ;;  %v1068_v14 = vpop.f32.mrb[5].mxu1  ;;  %v1460_v4 = vld [vmem:[#allocation2 + $0x1190] sm:$0xff]  ;;  %v1459_v8 = vld [vmem:[#allocation2 + $0x1188] sm:$0xff] }
 0x24a   :  { %v998_v21 = vadd.f32 %v997_v13, %v896_v6  ;;  %v1069_v15 = vadd.f32 %v1068_v14, %v904_v7  ;;  %v1462_v5 = vld [vmem:[#allocation2 + $0x11d0] sm:$0xff]  ;;  %v2377_v6 = vpack.c.bf16 %v1457_v3, %v1455_v2  ;;  %v1461_v9 = vld [vmem:[#allocation2 + $0x11c8] sm:$0xff] }
 0x24b   :  { %v1213_v22 = vmax.f32 %v996_v10, 0.0  ;;  %v1215_v23 = vmax.f32 %v1067_v12, 0.0  ;;  %v2379_v7 = vpack.c.bf16 %v1462_v5, %v1460_v4  ;;  %v1464_v10 = vld [vmem:[#allocation2 + $0x1210] sm:$0xff]  ;;  %v2381_v13 = vpack.c.bf16 %v1461_v9, %v1459_v8 }
 0x24c   :  { %v1214_v24 = vmax.f32 %v998_v21, 0.0  ;;  %v1216_v25 = vmax.f32 %v1069_v15, 0.0  ;;  %v1466_v12 = vld [vmem:[#allocation2 + $0x1250] sm:$0xff]  ;;  %v1463_v21 = vld [vmem:[#allocation2 + $0x1208] sm:$0xff] }
 0x24d   :  { %v1221_v26 = vmax.f32 %v1213_v22, %v1215_v23  ;;  %v2383_v14 = vpack.c.bf16 %v1466_v12, %v1464_v10  ;;  %v1465_v15 = vld [vmem:[#allocation2 + $0x1248] sm:$0xff]  ;;  %v1468_v22 = vld [vmem:[#allocation2 + $0x1290] sm:$0xff] }
 0x24e   :  { %v1222_v27 = vmax.f32 %v1214_v24, %v1216_v25  ;;  %v1470_v23 = vld [vmem:[#allocation2 + $0x12d0] sm:$0xff]  ;;  %v2385_v24 = vpack.c.bf16 %v1465_v15, %v1463_v21 }
 0x24f   :  { %v2387_v25 = vpack.c.bf16 %v1470_v23, %v1468_v22  ;;  %v1500_v2 = vld [vmem:[#allocation2 + $0x1690] sm:$0xff]  ;;  %v1259_v22 = vld [vmem:[#allocation2 + $0x1880] ss:$0 sm:$0xff] }
 0x250   :  { %v1502_v3 = vld [vmem:[#allocation2 + $0x16d0] sm:$0xff] }
 0x251   :  { %v2419_v5 = vpack.c.bf16 %v1502_v3, %v1500_v2  ;;  %v1504_v8 = vld [vmem:[#allocation2 + $0x1710] sm:$0xff]  ;;  %v1621_v3 = vld [vmem:[#allocation2 + $0x1318] sm:$0xff] }
 0x252   :  { %v1506_v9 = vld [vmem:[#allocation2 + $0x1750] sm:$0xff] }
 0x253   :  { %v2423_v12 = vpack.c.bf16 %v1506_v9, %v1504_v8  ;;  %v1625_v9 = vld [vmem:[#allocation2 + $0x1398] sm:$0xff] }
 0x288   :  { %v1137_v30 = vpop.f32.mrb[6].mxu0  ;;  %v1208_v31 = vpop.f32.mrb[6].mxu1 }
 0x289   :  { %v1138_v32 = vadd.f32 %v1137_v30, %v908_v18  ;;  %v1209_v33 = vadd.f32 %v1208_v31, %v916_v20  ;;  %v1139_v34 = vpop.f32.mrb[7].mxu0  ;;  %v1210_v35 = vpop.f32.mrb[7].mxu1  ;;  %v1472_v18 = vld [vmem:[#allocation2 + $0x1310] sm:$0xff]  ;;  %v1471_v30 = vld [vmem:[#allocation2 + $0x1308] sm:$0xff] }
 0x28a   :  { %v1140_v36 = vadd.f32 %v1139_v34, %v912_v28  ;;  %v1211_v37 = vadd.f32 %v1210_v35, %v920_v29  ;;  %v1474_v20 = vld [vmem:[#allocation2 + $0x1350] sm:$0xff]  ;;  %v1473_v31 = vld [vmem:[#allocation2 + $0x1348] sm:$0xff] }
 0x28b   :  { %v1217_v42 = vmax.f32 %v1138_v32, 0.0  ;;  %v1219_v43 = vmax.f32 %v1209_v33, 0.0  ;;  %v2391_v29 = vpack.c.bf16 %v1474_v20, %v1472_v18  ;;  %v1476_v32 = vld [vmem:[#allocation2 + $0x1390] sm:$0xff]  ;;  %v2393_v34 = vpack.c.bf16 %v1473_v31, %v1471_v30  ;;  %v1507_v20 = vld [vmem:[#allocation2 + $0x1788] sm:$0xff]  ;;  %v1598_v30 = vld [vmem:[#allocation2 + $0x1020] sm:$0xff] }
 0x28c   :  { %v1218_v38 = vmax.f32 %v1140_v36, 0.0  ;;  %v1220_v44 = vmax.f32 %v1211_v37, 0.0  ;;  %v1478_v33 = vld [vmem:[#allocation2 + $0x13d0] sm:$0xff]  ;;  %v1475_v36 = vld [vmem:[#allocation2 + $0x1388] sm:$0xff]  ;;  %v1600_v31 = vld [vmem:[#allocation2 + $0x1060] sm:$0xff] }
 0x28d   :  { %v1223_v45 = vmax.f32 %v1217_v42, %v1219_v43  ;;  %v2395_v35 = vpack.c.bf16 %v1478_v33, %v1476_v32  ;;  %v1477_v37 = vld [vmem:[#allocation2 + $0x13c8] sm:$0xff]  ;;  %v1480_v42 = vld [vmem:[#allocation2 + $0x1410] sm:$0xff]  ;;  %v1597_v32 = vld [vmem:[#allocation2 + $0x1018] sm:$0xff]  ;;  %v2431_v33 = vpack.c.bf16 %v1600_v31, %v1598_v30 }
 0x28e   :  { %v1224_v39 = vmax.f32 %v1218_v38, %v1220_v44  ;;  %v1482_v43 = vld [vmem:[#allocation2 + $0x1450] sm:$0xff]  ;;  %v2397_v38 = vpack.c.bf16 %v1477_v37, %v1475_v36  ;;  %v1604_v36 = vld [vmem:[#allocation2 + $0x10e0] sm:$0xff]  ;;  %v1637_v31 = vld [vmem:[#allocation2 + $0x1518] sm:$0xff] }
 0x28f   :  { %v1225_v46 = vmax.f32 %v1221_v26, %v1223_v45  ;;  %v1467_v26 = vld [vmem:[#allocation2 + $0x1288] sm:$0xff]  ;;  %v2399_v44 = vpack.c.bf16 %v1482_v43, %v1480_v42  ;;  %v1601_v43 = vld [vmem:[#allocation2 + $0x1098] sm:$0xff]  ;;  %2432 = vmatprep.subr.bf16.mxu1 %v2431_v33  ;;  %v1642_v33 = vld [vmem:[#allocation2 + $0x15a0] sm:$0xff] }
 0x290   :  { %v1226_v0 = vmax.f32 %v1222_v27, %v1224_v39  ;;  %v1469_v27 = vld [vmem:[#allocation2 + $0x12c8] sm:$0xff] }
 0x291   :  { %v2389_v28 = vpack.c.bf16 %v1469_v27, %v1467_v26  ;;  %v1479_v45 = vld [vmem:[#allocation2 + $0x1408] sm:$0xff]  ;;  %v1508_v26 = vld [vmem:[#allocation2 + $0x1790] sm:$0xff] }
 0x292   :  { %1324 = vmatprep.mubr.f32.mxu0 %v1226_v0  ;;  %v1481_v39 = vld [vmem:[#allocation2 + $0x1448] sm:$0xff]  ;;  %v1486_v0 = vld [vmem:[#allocation2 + $0x14d0] sm:$0xff] }
 0x293   :  { %1325 = vmatmul.mubr.f32.vlgmr.msra.gmra.mrb[8].mxu0 %v1225_v46  ;;  %v1484_v46 = vld [vmem:[#allocation2 + $0x1490] sm:$0xff]  ;;  %v2401_v11 = vpack.c.bf16 %v1481_v39, %v1479_v45  ;;  %v1608_v45 = vld [vmem:[#allocation2 + $0x1160] sm:$0xff] }
 0x294   :  { %2370 = vmatpush1.bf16.msra.mxu0 %v2369_v57  ;;  %v2403_v40 = vpack.c.bf16 %v1486_v0, %v1484_v46  ;;  %v1491_v57 = vld [vmem:[#allocation2 + $0x1588] sm:$0xff]  ;;  %v1510_v27 = vld [vmem:[#allocation2 + $0x17d0] sm:$0xff]  ;;  %v1605_v0 = vld [vmem:[#allocation2 + $0x1118] sm:$0xff] }
 0x295   :  { %2372 = vmatprep.subr.bf16.mxu0 %v2371_v58  ;;  %v1493_v58 = vld [vmem:[#allocation2 + $0x15c8] sm:$0xff]  ;;  %v2427_v18 = vpack.c.bf16 %v1510_v27, %v1508_v26  ;;  %v1633_v27 = vld [vmem:[#allocation2 + $0x1498] sm:$0xff] }
 0x296   :  { %v2413_v61 = vpack.c.bf16 %v1493_v58, %v1491_v57  ;;  %v1620_v57 = vld [vmem:[#allocation2 + $0x12e0] sm:$0xff] }
 0x298   :  { %2374 = vmatpush1.bf16.msra.mxu0 %v2373_v63  ;;  %v1495_v63 = vld [vmem:[#allocation2 + $0x1608] sm:$0xff] }
 0x299   :  { %2376 = vmatprep.subr.bf16.mxu0 %v2375_v1  ;;  %v1497_v1 = vld [vmem:[#allocation2 + $0x1648] sm:$0xff] }
 0x29a   :  { %v2417_v4 = vpack.c.bf16 %v1497_v1, %v1495_v63  ;;  %v1624_v63 = vld [vmem:[#allocation2 + $0x1360] sm:$0xff] }
 0x29c   :  { %2378 = vmatpush1.bf16.msra.mxu0 %v2377_v6  ;;  %v1499_v6 = vld [vmem:[#allocation2 + $0x1688] sm:$0xff] }
 0x29d   :  { %2380 = vmatprep.subr.bf16.mxu0 %v2379_v7  ;;  %v1501_v7 = vld [vmem:[#allocation2 + $0x16c8] sm:$0xff] }
 0x29e   :  { %v2421_v10 = vpack.c.bf16 %v1501_v7, %v1499_v6  ;;  %v1628_v6 = vld [vmem:[#allocation2 + $0x13e0] sm:$0xff] }
 0x2a0   :  { %2382 = vmatpush1.bf16.msra.mxu0 %v2381_v13  ;;  %v1503_v13 = vld [vmem:[#allocation2 + $0x1708] sm:$0xff] }
 0x2a1   :  { %2384 = vmatprep.subr.bf16.mxu0 %v2383_v14  ;;  %v1505_v14 = vld [vmem:[#allocation2 + $0x1748] sm:$0xff] }
 0x2a2   :  { %v2425_v21 = vpack.c.bf16 %v1505_v14, %v1503_v13  ;;  %v1632_v13 = vld [vmem:[#allocation2 + $0x1460] sm:$0xff] }
 0x2a4   :  { %2386 = vmatpush1.bf16.msra.mxu0 %v2385_v24 }
 0x2a5   :  { %2388 = vmatprep.subr.bf16.mxu0 %v2387_v25 }
 0x2a8   :  { %2390 = vmatpush1.bf16.msra.mxu0 %v2389_v28  ;;  %v1509_v28 = vld [vmem:[#allocation2 + $0x17c8] sm:$0xff] }
 0x2a9   :  { %2392 = vmatprep.subr.bf16.mxu0 %v2391_v29  ;;  %v2429_v29 = vpack.c.bf16 %v1509_v28, %v1507_v20  ;;  %v1638_v20 = vld [vmem:[#allocation2 + $0x1520] sm:$0xff] }
 0x2aa   :  { %v1640_v28 = vld [vmem:[#allocation2 + $0x1560] sm:$0xff] }
 0x2ab   :  { %v2471_v30 = vpack.c.bf16 %v1640_v28, %v1638_v20 }
 0x2ac   :  { %2394 = vmatpush1.bf16.msra.mxu0 %v2393_v34  ;;  %v1599_v34 = vld [vmem:[#allocation2 + $0x1058] sm:$0xff] }
 0x2ad   :  { %2396 = vmatprep.subr.bf16.mxu0 %v2395_v35  ;;  %v1602_v35 = vld [vmem:[#allocation2 + $0x10a0] sm:$0xff]  ;;  %v2433_v37 = vpack.c.bf16 %v1599_v34, %v1597_v32  ;;  %v1639_v32 = vld [vmem:[#allocation2 + $0x1558] sm:$0xff] }
 0x2ae   :  { %v2435_v42 = vpack.c.bf16 %v1604_v36, %v1602_v35  ;;  %v1644_v34 = vld [vmem:[#allocation2 + $0x15e0] sm:$0xff]  ;;  %v2473_v35 = vpack.c.bf16 %v1639_v32, %v1637_v31 }
 0x2af   :  { %v2475_v36 = vpack.c.bf16 %v1644_v34, %v1642_v33 }
 0x2b0   :  { %2398 = vmatpush1.bf16.msra.mxu0 %v2397_v38  ;;  %v1603_v38 = vld [vmem:[#allocation2 + $0x10d8] sm:$0xff] }
 0x2b1   :  { %2400 = vmatprep.subr.bf16.mxu0 %v2399_v44  ;;  %v1606_v44 = vld [vmem:[#allocation2 + $0x1120] sm:$0xff]  ;;  %v2437_v39 = vpack.c.bf16 %v1603_v38, %v1601_v43 }
 0x2b2   :  { %v2439_v46 = vpack.c.bf16 %v1608_v45, %v1606_v44  ;;  %v1646_v43 = vld [vmem:[#allocation2 + $0x1620] sm:$0xff] }
 0x2b3   :  { %v1648_v38 = vld [vmem:[#allocation2 + $0x1660] sm:$0xff] }
 0x2b4   :  { %2402 = vmatpush1.bf16.msra.mxu0 %v2401_v11  ;;  %v1607_v11 = vld [vmem:[#allocation2 + $0x1158] sm:$0xff]  ;;  %v2479_v45 = vpack.c.bf16 %v1648_v38, %v1646_v43 }
 0x2b5   :  { %2404 = vmatprep.subr.bf16.mxu0 %v2403_v40  ;;  %v1610_v40 = vld [vmem:[#allocation2 + $0x11a0] sm:$0xff]  ;;  %v2441_v47 = vpack.c.bf16 %v1607_v11, %v1605_v0 }
 0x2b6   :  { %v2443_v48 = vpack.c.bf16 %v1612_v41, %v1610_v40  ;;  %v1650_v0 = vld [vmem:[#allocation2 + $0x16a0] sm:$0xff] }
 0x2b7   :  { %v1652_v11 = vld [vmem:[#allocation2 + $0x16e0] sm:$0xff] }
 0x2b8   :  { %2406 = vmatpush1.bf16.msra.mxu0 %v2405_v50  ;;  %v1611_v50 = vld [vmem:[#allocation2 + $0x11d8] sm:$0xff]  ;;  %v2483_v41 = vpack.c.bf16 %v1652_v11, %v1650_v0 }
 0x2b9   :  { %2408 = vmatprep.subr.bf16.mxu0 %v2407_v51  ;;  %v1614_v51 = vld [vmem:[#allocation2 + $0x1220] sm:$0xff]  ;;  %v2445_v53 = vpack.c.bf16 %v1611_v50, %v1609_v49 }
 0x2ba   :  { %v2447_v16 = vpack.c.bf16 %v1616_v52, %v1614_v51  ;;  %v1654_v49 = vld [vmem:[#allocation2 + $0x1720] sm:$0xff] }
 0x2bb   :  { %v1656_v50 = vld [vmem:[#allocation2 + $0x1760] sm:$0xff] }
 0x2bc   :  { %2410 = vmatpush1.bf16.msra.mxu0 %v2409_v55  ;;  %v1615_v55 = vld [vmem:[#allocation2 + $0x1258] sm:$0xff]  ;;  %v2487_v52 = vpack.c.bf16 %v1656_v50, %v1654_v49 }
 0x2bd   :  { %2412 = vmatprep.subr.bf16.mxu0 %v2411_v56  ;;  %v1618_v56 = vld [vmem:[#allocation2 + $0x12a0] sm:$0xff]  ;;  %v2449_v58 = vpack.c.bf16 %v1615_v55, %v1613_v54 }
 0x2be   :  { %v2451_v59 = vpack.c.bf16 %v1620_v57, %v1618_v56 }
 0x2c0   :  { %2414 = vmatpush1.bf16.msra.mxu0 %v2413_v61  ;;  %v1619_v61 = vld [vmem:[#allocation2 + $0x12d8] sm:$0xff] }
 0x2c1   :  { %2416 = vmatprep.subr.bf16.mxu0 %v2415_v62  ;;  %v1622_v62 = vld [vmem:[#allocation2 + $0x1320] sm:$0xff]  ;;  %v2453_v1 = vpack.c.bf16 %v1619_v61, %v1617_v60  ;;  %v1655_v60 = vld [vmem:[#allocation2 + $0x1758] sm:$0xff] }
 0x2c2   :  { %v2455_v2 = vpack.c.bf16 %v1624_v63, %v1622_v62  ;;  %v1658_v62 = vld [vmem:[#allocation2 + $0x17a0] sm:$0xff] }
 0x2c3   :  { %v1660_v63 = vld [vmem:[#allocation2 + $0x17e0] sm:$0xff] }
 0x2c4   :  { %2418 = vmatpush1.bf16.msra.mxu0 %v2417_v4  ;;  %v1623_v4 = vld [vmem:[#allocation2 + $0x1358] sm:$0xff] }
 0x2c5   :  { %2420 = vmatprep.subr.bf16.mxu0 %v2419_v5  ;;  %v1626_v5 = vld [vmem:[#allocation2 + $0x13a0] sm:$0xff]  ;;  %v2457_v7 = vpack.c.bf16 %v1623_v4, %v1621_v3  ;;  %v1659_v3 = vld [vmem:[#allocation2 + $0x17d8] sm:$0xff] }
 0x2c6   :  { %v2459_v8 = vpack.c.bf16 %v1628_v6, %v1626_v5  ;;  %v1512_v5 = vld [vmem:[#allocation2 + $0x1900] ss:$8 sm:$0x3] }
 0x2c7   :  { %v1517_v6 = vrot.slane %v1512_v5, %v2580_v17 }
 0x2c8   :  { %2422 = vmatpush1.bf16.msra.mxu0 %v2421_v10  ;;  %v1627_v10 = vld [vmem:[#allocation2 + $0x13d8] sm:$0xff] }
 0x2c9   :  { %2424 = vmatprep.subr.bf16.mxu0 %v2423_v12  ;;  %v1630_v12 = vld [vmem:[#allocation2 + $0x1420] sm:$0xff]  ;;  %v2461_v14 = vpack.c.bf16 %v1627_v10, %v1625_v9 }
 0x2cc   :  { %2426 = vmatpush1.bf16.msra.mxu0 %v2425_v21  ;;  %v2463_v21 = vpack.c.bf16 %v1632_v13, %v1630_v12 }
 0x2cd   :  { %2428 = vmatprep.subr.bf16.mxu0 %v2427_v18  ;;  %v1635_v18 = vld [vmem:[#allocation2 + $0x14d8] sm:$0xff] }
 0x2d0   :  { %2430 = vmatpush1.bf16.msra.mxu0 %v2429_v29  ;;  %v2469_v29 = vpack.c.bf16 %v1635_v18, %v1633_v27 }
 0x366   :  { %v1788_v15 = vpop.f32.mrb[8].mxu0 }
 0x367   :  { %v1789_v23 = vpop.f32.mrb[9].mxu0 }
 0x368   :  { %v1790_v24 = vadd.f32 %v1789_v23, %v1788_v15  ;;  %v1629_v15 = vld [vmem:[#allocation2 + $0x1418] sm:$0xff]  ;;  %v1634_v23 = vld [vmem:[#allocation2 + $0x14a0] sm:$0xff] }
 0x36a   :  { %v1327_v25 = vadd.f32 %v1790_v24, %v1259_v22  ;;  %v1631_v22 = vld [vmem:[#allocation2 + $0x1458] sm:$0xff]  ;;  %v1636_v24 = vld [vmem:[#allocation2 + $0x14e0] sm:$0xff] }
 0x36b   :  { %v2467_v26 = vpack.c.bf16 %v1636_v24, %v1634_v23 }
 0x36c   :  { %1330 = vst [vmem:[%s2643_s3] sm:$0xff] %v1327_v25  ;;  %1441 = vmatmul.mubr.f32.vlgmr.msra.gmra.mrb[8].mxu1 %v1327_v25  ;;  %v2465_v25 = vpack.c.bf16 %v1631_v22, %v1629_v15 }
 0x36d   :  { %2434 = vmatpush1.bf16.msra.mxu1 %v2433_v37  ;;  %v1641_v37 = vld [vmem:[#allocation2 + $0x1598] sm:$0xff] }
 0x36e   :  { %2436 = vmatprep.subr.bf16.mxu1 %v2435_v42  ;;  %v1643_v42 = vld [vmem:[#allocation2 + $0x15d8] sm:$0xff] }
 0x36f   :  { %v2477_v44 = vpack.c.bf16 %v1643_v42, %v1641_v37 }
 0x371   :  { %2438 = vmatpush1.bf16.msra.mxu1 %v2437_v39  ;;  %v1645_v39 = vld [vmem:[#allocation2 + $0x1618] sm:$0xff] }
 0x372   :  { %2440 = vmatprep.subr.bf16.mxu1 %v2439_v46  ;;  %v1647_v46 = vld [vmem:[#allocation2 + $0x1658] sm:$0xff] }
 0x373   :  { %v2481_v40 = vpack.c.bf16 %v1647_v46, %v1645_v39 }
 0x375   :  { %2442 = vmatpush1.bf16.msra.mxu1 %v2441_v47  ;;  %v1649_v47 = vld [vmem:[#allocation2 + $0x1698] sm:$0xff] }
 0x376   :  { %2444 = vmatprep.subr.bf16.mxu1 %v2443_v48  ;;  %v1651_v48 = vld [vmem:[#allocation2 + $0x16d8] sm:$0xff] }
 0x377   :  { %v2485_v51 = vpack.c.bf16 %v1651_v48, %v1649_v47 }
 0x379   :  { %2446 = vmatpush1.bf16.msra.mxu1 %v2445_v53  ;;  %v1364_v53 = vld [vmem:[#allocation2 + $0x18c0] ss:$8 sm:$0x3] }
 0x37a   :  { %2448 = vmatprep.subr.bf16.mxu1 %v2447_v16  ;;  %v1373_v16 = vrot.slane %v1364_v53, %v2584_v19  ;;  %v1369_v54 = vrot.slane %v1364_v53, %v2580_v17 }
 0x37d   :  { %2450 = vmatpush1.bf16.msra.mxu1 %v2449_v58 }
 0x37e   :  { %2452 = vmatprep.subr.bf16.mxu1 %v2451_v59  ;;  %v1653_v59 = vld [vmem:[#allocation2 + $0x1718] sm:$0xff] }
 0x37f   :  { %v2489_v61 = vpack.c.bf16 %v1655_v60, %v1653_v59 }
 0x381   :  { %2454 = vmatpush1.bf16.msra.mxu1 %v2453_v1  ;;  %v2491_v1 = vpack.c.bf16 %v1660_v63, %v1658_v62 }
 0x382   :  { %2456 = vmatprep.subr.bf16.mxu1 %v2455_v2  ;;  %v1657_v2 = vld [vmem:[#allocation2 + $0x1798] sm:$0xff] }
 0x383   :  { %v2493_v4 = vpack.c.bf16 %v1659_v3, %v1657_v2 }
 0x385   :  { %2458 = vmatpush1.bf16.msra.mxu1 %v2457_v7  ;;  %v1521_v7 = vrot.slane %v1512_v5, %v2584_v19 }
 0x386   :  { %2460 = vmatprep.subr.bf16.mxu1 %v2459_v8 }
 0x389   :  { %2462 = vmatpush1.bf16.msra.mxu1 %v2461_v14 }
 0x38a   :  { %2464 = vmatprep.subr.bf16.mxu1 %v2463_v21  ;;  %v1662_v21 = vld [vmem:[#allocation2 + $0x1940] ss:$8 sm:$0x3] }
 0x38b   :  { %v1667_v15 = vrot.slane %v1662_v21, %v2580_v17  ;;  %v1671_v22 = vrot.slane %v1662_v21, %v2584_v19 }
 0x38d   :  { %2466 = vmatpush1.bf16.msra.mxu1 %v2465_v25 }
 0x38e   :  { %2468 = vmatprep.subr.bf16.mxu1 %v2467_v26 }
 0x391   :  { %2470 = vmatpush1.bf16.msra.mxu1 %v2469_v29 }
 0x392   :  { %2472 = vmatprep.subr.bf16.mxu1 %v2471_v30 }
 0x395   :  { %2474 = vmatpush1.bf16.msra.mxu1 %v2473_v35 }
 0x396   :  { %2476 = vmatprep.subr.bf16.mxu1 %v2475_v36 }
 0x399   :  { %2478 = vmatpush1.bf16.msra.mxu1 %v2477_v44 }
 0x39a   :  { %2480 = vmatprep.subr.bf16.mxu1 %v2479_v45 }
 0x39d   :  { %2482 = vmatpush1.bf16.msra.mxu1 %v2481_v40 }
 0x39e   :  { %2484 = vmatprep.subr.bf16.mxu1 %v2483_v41 }
 0x3a1   :  { %2486 = vmatpush1.bf16.msra.mxu1 %v2485_v51 }
 0x3a2   :  { %2488 = vmatprep.subr.bf16.mxu1 %v2487_v52 }
 0x3a5   :  { %2490 = vmatpush1.bf16.msra.mxu1 %v2489_v61 }
 0x3a6   :  { %2492 = vmatprep.subr.bf16.mxu1 %v2491_v1 }
 0x3a9   :  { %2494 = vmatpush1.bf16.msra.mxu1 %v2493_v4 }
 0x43f   :  { %v1442_v55 = vpop.f32.mrb[8].mxu1 }
 0x440   :  { %v1444_v56 = vpop.f32.mrb[9].mxu1  ;;  %v1443_v58 = vadd.f32 %v1442_v55, %v1369_v54 }
 0x441   :  { %v1445_v57 = vadd.f32 %v1444_v56, %v1373_v16 }
 0x443   :  { %1588 = vmatprep.mubr.f32.mxu0 %v1445_v57 }
 0x444   :  { %1589 = vmatmul.mubr.f32.vlgmr.msra.gmra.mrb[10].mxu0 %v1443_v58 }
 0x517   :  { %v1590_v8 = vpop.f32.mrb[10].mxu0 }
 0x518   :  { %v1591_v9 = vadd.f32 %v1590_v8, %v1517_v6  ;;  %v1592_v10 = vpop.f32.mrb[11].mxu0 }
 0x519   :  { %v1593_v12 = vadd.f32 %v1592_v10, %v1521_v7 }
 0x51a   :  { %v1595_v14 = vmax.f32 %v1591_v9, 0.0 }
 0x51b   :  { %v1596_v13 = vmax.f32 %v1593_v12, 0.0 }
 0x51d   :  { %1738 = vmatprep.mubr.f32.mxu1 %v1596_v13 }
 0x51e   :  { %1739 = vmatmul.mubr.f32.vlgmr.msra.gmra.mrb[10].mxu1 %v1595_v14 }
 0x5f1   :  { %v1740_v23 = vpop.f32.mrb[10].mxu1 }
 0x5f2   :  { %v1741_v24 = vadd.f32 %v1740_v23, %v1667_v15  ;;  %v1742_v25 = vpop.f32.mrb[11].mxu1 }
 0x5f3   :  { %v1743_v26 = vadd.f32 %v1742_v25, %v1671_v22 }
 0x5f4   :  { %1745 = vst [vmem:[%s2642_s2] sm:$0xff] %v1741_v24 }
 0x5f5   :  { %1746 = vst [vmem:[%s2642_s2 + $0x8] sm:$0xff] %v1743_v26 }
 0x5f6   :  { %1755 = vsyncpa [#allocation3], 1 }

</bundles_post_ra>
